<compile_context>
chip_gen: v7x
topology: tpu7x:2x2x1
jax: 0.10.0
libtpu: 0.0.40
codegen_flags: <defaults>
</compile_context>

<pallas_src>
import jax
import jax.numpy as jnp
from jax.experimental import pallas as pl
from jax.experimental.pallas import tpu as pltpu

SUB = 8       # f32 sublane tile
LANE = 128    # lane tile
BP = SUB      # per-timestep batch rows, padded to one sublane tile

# rows inside the bias block of the slab
BR_ENC_GI = 0   # encoder gi bias   (r: ih+hh, z: ih+hh, n: ih)
BR_DEC_GI = 1   # decoder first-step gi bias
BR_FB_GI = 2    # folded feedback gi bias  (bout @ wih_dec + biases)
BR_HN = 3       # hidden-n biases: encoder at lane 0, decoder at lane 128
BR_FC = 4       # fc bias at cols 0:F
BR_OUT = 5      # out bias at cols 0:c_out


def _rpad(n):
    return ((n + SUB - 1) // SUB) * SUB


def make_layout(enc_in, dec_in, c_out, d_model):
    """Row/lane offsets of every parameter inside the packed slab."""
    H = d_model
    F = d_model // 8
    assert H <= LANE, "gate packing at lane offsets 0/128/256 assumes hidden <= 128"
    assert dec_in == c_out and enc_in == dec_in, "autoregressive feedback needs equal dims"
    layout = {"H": H, "F": F, "enc_in": enc_in, "dec_in": dec_in, "c_out": c_out,
              "GR": 0, "GZ": LANE, "GN": 2 * LANE, "W": 3 * LANE}
    row = 0

    def blk(name, rows):
        nonlocal row
        layout[name] = row
        row += _rpad(rows)

    blk("ue", H)        # encoder hidden->gates  (H, W)
    blk("ud", H)        # decoder hidden->gates  (H, W)
    blk("we", enc_in)   # encoder input->gates
    blk("wd", dec_in)   # decoder input->gates (first step only)
    blk("vf", F)        # folded feedback fc->gates  (wout @ wih_dec)
    blk("wfc", H)       # fc weight (H, F) at cols 0:F
    blk("wout", F)      # out weight (F, c_out) at cols 0:c_out
    blk("bias", SUB)    # all bias rows (BR_* above)
    layout["rows"] = row
    return layout


def init_raw_params(key, enc_in, dec_in, c_out, d_model):
    """Deterministic init matching the PyTorch module's parameter shapes (raw layout)."""
    H = d_model
    F_units = d_model // 8
    ks = jax.random.split(key, 12)

    def u(k, shape, fan_in):
        bound = 1.0 / (fan_in ** 0.5)
        return jax.random.uniform(k, shape, jnp.float32, -bound, bound)

    return {
        "enc.weight_ih": u(ks[0], (3 * H, enc_in), H),
        "enc.weight_hh": u(ks[1], (3 * H, H), H),
        "enc.bias_ih": u(ks[2], (3 * H,), H),
        "enc.bias_hh": u(ks[3], (3 * H,), H),
        "dec.weight_ih": u(ks[4], (3 * H, dec_in), H),
        "dec.weight_hh": u(ks[5], (3 * H, H), H),
        "dec.bias_ih": u(ks[6], (3 * H,), H),
        "dec.bias_hh": u(ks[7], (3 * H,), H),
        "fc.weight": u(ks[8], (F_units, H), H),
        "fc.bias": u(ks[9], (F_units,), H),
        "out.weight": u(ks[10], (c_out, F_units), F_units),
        "out.bias": u(ks[11], (c_out,), F_units),
    }


def prepare_params(raw, layout):
    """Pack all parameters (pre-transposed, per-gate, feedback-folded) into one slab."""
    H, F = layout["H"], layout["F"]
    W = layout["W"]
    GR, GZ, GN = layout["GR"], layout["GZ"], layout["GN"]
    c_out = layout["c_out"]

    def split3(w):    # (3H, X) -> three (X, H) matrices (pre-transposed), order r,z,n
        return [jnp.transpose(w[g * H:(g + 1) * H, :]) for g in range(3)]

    def split3b(b):   # (3H,) -> three (1, H) rows
        return [b[g * H:(g + 1) * H].reshape(1, H) for g in range(3)]

    we = split3(raw["enc.weight_ih"]); ue = split3(raw["enc.weight_hh"])
    bie = split3b(raw["enc.bias_ih"]); bhe = split3b(raw["enc.bias_hh"])
    wd = split3(raw["dec.weight_ih"]); ud = split3(raw["dec.weight_hh"])
    bid = split3b(raw["dec.bias_ih"]); bhd = split3b(raw["dec.bias_hh"])

    wfc = jnp.transpose(raw["fc.weight"])        # (H, F)
    wout = jnp.transpose(raw["out.weight"])      # (F, c_out)
    bfc = raw["fc.bias"].reshape(1, F)
    bout = raw["out.bias"].reshape(1, c_out)

    # Folded decoder feedback: o = fc @ wout + bout; gi_g(next) = o @ wd_g + b_ih_g [+ b_hh_g]
    #   => gi_g(next) = fc @ (wout @ wd_g) + (bout @ wd_g + b_ih_g [+ b_hh_g for r,z])
    vf = [wout @ wd[g] for g in range(3)]
    bf = [bout @ wd[g] + bid[g] for g in range(3)]
    bf[0] = bf[0] + bhd[0]
    bf[1] = bf[1] + bhd[1]

    slab = jnp.zeros((layout["rows"], W), jnp.float32)

    def put(s, r, c, m):
        return s.at[r:r + m.shape[0], c:c + m.shape[1]].set(m.astype(jnp.float32))

    for g, off in enumerate((GR, GZ, GN)):
        slab = put(slab, layout["ue"], off, ue[g])
        slab = put(slab, layout["ud"], off, ud[g])
        slab = put(slab, layout["we"], off, we[g])
        slab = put(slab, layout["wd"], off, wd[g])
        slab = put(slab, layout["vf"], off, vf[g])
        slab = put(slab, layout["bias"] + BR_FB_GI, off, bf[g])

    # gi biases: r/z fold bias_ih + bias_hh; n keeps bias_ih only (bias_hh_n is gated by r)
    slab = put(slab, layout["bias"] + BR_ENC_GI, GR, bie[0] + bhe[0])
    slab = put(slab, layout["bias"] + BR_ENC_GI, GZ, bie[1] + bhe[1])
    slab = put(slab, layout["bias"] + BR_ENC_GI, GN, bie[2])
    slab = put(slab, layout["bias"] + BR_DEC_GI, GR, bid[0] + bhd[0])
    slab = put(slab, layout["bias"] + BR_DEC_GI, GZ, bid[1] + bhd[1])
    slab = put(slab, layout["bias"] + BR_DEC_GI, GN, bid[2])
    slab = put(slab, layout["bias"] + BR_HN, GR, bhe[2])     # encoder bias_hh_n
    slab = put(slab, layout["bias"] + BR_HN, GZ, bhd[2])     # decoder bias_hh_n
    slab = put(slab, layout["wfc"], 0, wfc)
    slab = put(slab, layout["wout"], 0, wout)
    slab = put(slab, layout["bias"] + BR_FC, 0, bfc)
    slab = put(slab, layout["bias"] + BR_OUT, 0, bout)
    return slab


def make_forward(layout, batch_size, seq_len, pred_len):
    H, F, W = layout["H"], layout["F"], layout["W"]
    GR, GZ, GN = layout["GR"], layout["GZ"], layout["GN"]
    RZ = 2 * LANE                      # lanes [0, RZ) hold the r and z gate columns
    C_IN, DEC_IN, C_OUT = layout["enc_in"], layout["dec_in"], layout["c_out"]
    O_UE, O_UD = layout["ue"], layout["ud"]
    O_WE, O_WD, O_VF = layout["we"], layout["wd"], layout["vf"]
    O_WFC, O_WOUT, O_BIAS = layout["wfc"], layout["wout"], layout["bias"]
    T_in, T_pred, B = seq_len, pred_len, batch_size
    f32 = jnp.float32

    def dot(a, b):
        return jnp.dot(a, b, preferred_element_type=f32)

    def sigmoid(v):                    # single-EUP logistic on the recurrent critical path
        return 0.5 * (jnp.tanh(0.5 * v) + 1.0)

    def kernel(x_ref, slab_ref, out_ref, fc_ref):
        bias = slab_ref[O_BIAS:O_BIAS + SUB, :]               # (8, W) all bias rows

        def brow(r, col, width, rows):                        # hoisted one-time broadcasts
            return jnp.broadcast_to(bias[r:r + 1, col:col + width], (rows, width))

        # ---- encoder: all timesteps' input projections in ONE hoisted matmul ----
        gi_enc = dot(x_ref[...], slab_ref[O_WE:O_WE + C_IN, :]) \
            + brow(BR_ENC_GI, 0, W, T_in * BP)                # (T_in*BP, W)

        be_hn = brow(BR_HN, GR, H, BP)
        h = jnp.zeros((BP, H), f32)
        for t in range(T_in):                                 # fully unrolled
            lo = t * BP
            gh = dot(h, slab_ref[O_UE:O_UE + H, :])           # (BP, W): all 3 gates, 1 matmul
            rz = sigmoid(gi_enc[lo:lo + BP, 0:RZ] + gh[:, 0:RZ])
            r = rz[:, GR:GR + H]
            z = rz[:, GZ:GZ + H]
            n = jnp.tanh(gi_enc[lo:lo + BP, GN:GN + H] + r * (gh[:, GN:GN + H] + be_hn))
            h = (1.0 - z) * n + z * h

        # ---- decoder: autoregressive, seeded with the last encoder input timestep ----
        bd_hn = brow(BR_HN, GZ, H, BP)
        bf_all = brow(BR_FB_GI, 0, W, BP)
        bfc = brow(BR_FC, 0, F, BP)

        x_last = x_ref[(T_in - 1) * BP:T_in * BP, :]          # (BP, C_IN)
        gi = dot(x_last, slab_ref[O_WD:O_WD + DEC_IN, :]) + brow(BR_DEC_GI, 0, W, BP)

        for di in range(T_pred):                              # fully unrolled
            gh = dot(h, slab_ref[O_UD:O_UD + H, :])           # (BP, W)
            rz = sigmoid(gi[:, 0:RZ] + gh[:, 0:RZ])
            r = rz[:, GR:GR + H]
            z = rz[:, GZ:GZ + H]
            n = jnp.tanh(gi[:, GN:GN + H] + r * (gh[:, GN:GN + H] + bd_hn))
            h = (1.0 - z) * n + z * h

            fc = jnp.maximum(dot(h, slab_ref[O_WFC:O_WFC + H, 0:F]) + bfc, 0.0)
            fc_ref[di * BP:(di + 1) * BP, :] = fc             # park fc; `out` is deferred

            if di + 1 < T_pred:
                # folded feedback: next-step gi straight from fc (wout@wih_dec in vf block)
                gi = dot(fc, slab_ref[O_VF:O_VF + F, :]) + bf_all

        # ---- deferred output projection: one matmul over all stored fc activations ----
        fc_all = fc_ref[...]                                  # (T_pred*BP, F)
        out_ref[...] = dot(fc_all, slab_ref[O_WOUT:O_WOUT + F, 0:C_OUT]) \
            + brow(BR_OUT, 0, C_OUT, T_pred * BP)

    vmem = pl.BlockSpec(memory_space=pltpu.MemorySpace.VMEM)
    call = pl.pallas_call(
        kernel,
        out_shape=jax.ShapeDtypeStruct((T_pred * BP, C_OUT), jnp.float32),
        in_specs=[vmem, vmem],
        out_specs=vmem,
        scratch_shapes=[pltpu.VMEM((T_pred * BP, F), jnp.float32)],
    )

    @jax.jit
    def forward(x, slab):
        # x: (B, T_in, C_IN) -> time-major rows, batch padded to the f32 sublane tile
        xt = jnp.transpose(x, (1, 0, 2)).astype(jnp.float32)            # (T_in, B, C)
        xp = jnp.zeros((T_in, BP, C_IN), jnp.float32).at[:, :B, :].set(xt)
        out = call(xp.reshape(T_in * BP, C_IN), slab)                   # (T_pred*BP, C_OUT)
        out = out.reshape(T_pred, BP, C_OUT)[:, :B, :]
        return jnp.transpose(out, (1, 0, 2))                            # (B, T_pred, C_OUT)

    return forward


def reference_forward(x, raw, pred_len):
    """Pure-JAX reference replicating the PyTorch Model.forward (unfused weights)."""
    B = x.shape[0]
    H = raw["enc.weight_hh"].shape[1]

    def gru(x_t, h, wih, whh, bih, bhh):
        gi = x_t @ wih.T + bih
        gh = h @ whh.T + bhh
        r = jax.nn.sigmoid(gi[:, :H] + gh[:, :H])
        z = jax.nn.sigmoid(gi[:, H:2 * H] + gh[:, H:2 * H])
        n = jnp.tanh(gi[:, 2 * H:] + r * gh[:, 2 * H:])
        return (1.0 - z) * n + z * h

    h = jnp.zeros((B, H), jnp.float32)
    for t in range(x.shape[1]):
        h = gru(x[:, t, :], h, raw["enc.weight_ih"], raw["enc.weight_hh"],
                raw["enc.bias_ih"], raw["enc.bias_hh"])
    inp = x[:, -1, :]
    outs = []
    for _ in range(pred_len):
        h = gru(inp, h, raw["dec.weight_ih"], raw["dec.weight_hh"],
                raw["dec.bias_ih"], raw["dec.bias_hh"])
        fc = jnp.maximum(h @ raw["fc.weight"].T + raw["fc.bias"], 0.0)
        o = fc @ raw["out.weight"].T + raw["out.bias"]
        outs.append(o)
        inp = o
    return jnp.stack(outs, axis=1)


if __name__ == "__main__":
    # configs: enc_in = dec_in = c_out = 4, d_model = 32, seq_len = 8, pred_len = 8, batch = 2.
    B, T_in, pred_len = 2, 8, 8
    enc_in = dec_in = c_out = 4
    d_model = 32

    key = jax.random.PRNGKey(0)
    kx, kp = jax.random.split(key)
    x = jax.random.normal(kx, (B, T_in, enc_in), jnp.float32)

    raw = init_raw_params(kp, enc_in, dec_in, c_out, d_model)
    layout = make_layout(enc_in, dec_in, c_out, d_model)
    slab = prepare_params(raw, layout)
    forward = make_forward(layout, B, T_in, pred_len)

    out = jax.block_until_ready(forward(x, slab))
    ref = reference_forward(x, raw, pred_len)

    assert out.shape == (B, pred_len, c_out)
    assert jnp.allclose(out, ref, atol=5e-4, rtol=5e-4), "kernel/reference mismatch"
    print("KERNEL_OK")
</pallas_src>

<mosaic_0001>
module attributes {stable_mosaic.version = 11 : i64} {
  func.func @kernel(%arg0: memref<64x4xf32, #tpu.memory_space<vmem>>, %arg1: memref<136x384xf32, #tpu.memory_space<vmem>>, %arg2: memref<64x4xf32, #tpu.memory_space<vmem>>, %arg3: memref<64x4xf32, #tpu.memory_space<vmem>>) attributes {dimension_semantics = [], scalar_prefetch = 0 : i64, scratch_operands = 1 : i64, tpu.core_type = #tpu.core_type<tc>} {
    %c128 = arith.constant 128 : index
    %c0 = arith.constant 0 : index
    %0 = vector.load %arg1[%c128, %c0] : memref<136x384xf32, #tpu.memory_space<vmem>>, vector<8x384xf32>
    %c0_0 = arith.constant 0 : index
    %c0_1 = arith.constant 0 : index
    %1 = vector.load %arg0[%c0_0, %c0_1] : memref<64x4xf32, #tpu.memory_space<vmem>>, vector<64x4xf32>
    %c64 = arith.constant 64 : index
    %c0_2 = arith.constant 0 : index
    %2 = vector.load %arg1[%c64, %c0_2] : memref<136x384xf32, #tpu.memory_space<vmem>>, vector<4x384xf32>
    %cst = arith.constant dense<0.000000e+00> : vector<64x384xf32>
    %3 = tpu.matmul %1, %2, %cst {dimension_numbers = #tpu.dot_dimension_numbers<[1], [0], [0], [1], [0, 0, 1, 1], [], []>} : vector<64x4xf32>, vector<4x384xf32>, vector<64x384xf32> -> vector<64x384xf32>
    %4 = vector.extract_strided_slice %0 {offsets = [0, 0], sizes = [1, 384], strides = [1, 1]} : vector<8x384xf32> to vector<1x384xf32>
    %5 = vector.shape_cast %4 : vector<1x384xf32> to vector<1x384xf32>
    %6 = vector.broadcast %5 : vector<1x384xf32> to vector<64x384xf32>
    %7 = arith.addf %3, %6 : vector<64x384xf32>
    %8 = vector.extract_strided_slice %0 {offsets = [3, 0], sizes = [1, 32], strides = [1, 1]} : vector<8x384xf32> to vector<1x32xf32>
    %9 = vector.shape_cast %8 : vector<1x32xf32> to vector<1x32xf32>
    %10 = vector.broadcast %9 : vector<1x32xf32> to vector<8x32xf32>
    %cst_3 = arith.constant 0.000000e+00 : f32
    %11 = vector.broadcast %cst_3 : f32 to vector<8x32xf32>
    %c0_4 = arith.constant 0 : index
    %c0_5 = arith.constant 0 : index
    %12 = vector.load %arg1[%c0_4, %c0_5] : memref<136x384xf32, #tpu.memory_space<vmem>>, vector<32x384xf32>
    %cst_6 = arith.constant dense<0.000000e+00> : vector<8x384xf32>
    %13 = tpu.matmul %11, %12, %cst_6 {dimension_numbers = #tpu.dot_dimension_numbers<[1], [0], [0], [1], [0, 0, 1, 1], [], []>} : vector<8x32xf32>, vector<32x384xf32>, vector<8x384xf32> -> vector<8x384xf32>
    %14 = vector.extract_strided_slice %7 {offsets = [0, 0], sizes = [8, 256], strides = [1, 1]} : vector<64x384xf32> to vector<8x256xf32>
    %15 = vector.extract_strided_slice %13 {offsets = [0, 0], sizes = [8, 256], strides = [1, 1]} : vector<8x384xf32> to vector<8x256xf32>
    %16 = arith.addf %14, %15 : vector<8x256xf32>
    %cst_7 = arith.constant 5.000000e-01 : f32
    %17 = vector.broadcast %cst_7 : f32 to vector<8x256xf32>
    %18 = arith.mulf %17, %16 : vector<8x256xf32>
    %19 = math.tanh %18 : vector<8x256xf32>
    %cst_8 = arith.constant 1.000000e+00 : f32
    %20 = vector.broadcast %cst_8 : f32 to vector<8x256xf32>
    %21 = arith.addf %19, %20 : vector<8x256xf32>
    %cst_9 = arith.constant 5.000000e-01 : f32
    %22 = vector.broadcast %cst_9 : f32 to vector<8x256xf32>
    %23 = arith.mulf %22, %21 : vector<8x256xf32>
    %24 = vector.extract_strided_slice %23 {offsets = [0, 0], sizes = [8, 32], strides = [1, 1]} : vector<8x256xf32> to vector<8x32xf32>
    %25 = vector.extract_strided_slice %23 {offsets = [0, 128], sizes = [8, 32], strides = [1, 1]} : vector<8x256xf32> to vector<8x32xf32>
    %26 = vector.extract_strided_slice %7 {offsets = [0, 256], sizes = [8, 32], strides = [1, 1]} : vector<64x384xf32> to vector<8x32xf32>
    %27 = vector.extract_strided_slice %13 {offsets = [0, 256], sizes = [8, 32], strides = [1, 1]} : vector<8x384xf32> to vector<8x32xf32>
    %28 = arith.addf %27, %10 : vector<8x32xf32>
    %29 = arith.mulf %24, %28 : vector<8x32xf32>
    %30 = arith.addf %26, %29 : vector<8x32xf32>
    %31 = math.tanh %30 : vector<8x32xf32>
    %cst_10 = arith.constant 1.000000e+00 : f32
    %32 = vector.broadcast %cst_10 : f32 to vector<8x32xf32>
    %33 = arith.subf %32, %25 : vector<8x32xf32>
    %34 = arith.mulf %33, %31 : vector<8x32xf32>
    %35 = arith.mulf %25, %11 : vector<8x32xf32>
    %36 = arith.addf %34, %35 : vector<8x32xf32>
    %c0_11 = arith.constant 0 : index
    %c0_12 = arith.constant 0 : index
    %37 = vector.load %arg1[%c0_11, %c0_12] : memref<136x384xf32, #tpu.memory_space<vmem>>, vector<32x384xf32>
    %cst_13 = arith.constant dense<0.000000e+00> : vector<8x384xf32>
    %38 = tpu.matmul %36, %37, %cst_13 {dimension_numbers = #tpu.dot_dimension_numbers<[1], [0], [0], [1], [0, 0, 1, 1], [], []>} : vector<8x32xf32>, vector<32x384xf32>, vector<8x384xf32> -> vector<8x384xf32>
    %39 = vector.extract_strided_slice %7 {offsets = [8, 0], sizes = [8, 256], strides = [1, 1]} : vector<64x384xf32> to vector<8x256xf32>
    %40 = vector.extract_strided_slice %38 {offsets = [0, 0], sizes = [8, 256], strides = [1, 1]} : vector<8x384xf32> to vector<8x256xf32>
    %41 = arith.addf %39, %40 : vector<8x256xf32>
    %cst_14 = arith.constant 5.000000e-01 : f32
    %42 = vector.broadcast %cst_14 : f32 to vector<8x256xf32>
    %43 = arith.mulf %42, %41 : vector<8x256xf32>
    %44 = math.tanh %43 : vector<8x256xf32>
    %cst_15 = arith.constant 1.000000e+00 : f32
    %45 = vector.broadcast %cst_15 : f32 to vector<8x256xf32>
    %46 = arith.addf %44, %45 : vector<8x256xf32>
    %cst_16 = arith.constant 5.000000e-01 : f32
    %47 = vector.broadcast %cst_16 : f32 to vector<8x256xf32>
    %48 = arith.mulf %47, %46 : vector<8x256xf32>
    %49 = vector.extract_strided_slice %48 {offsets = [0, 0], sizes = [8, 32], strides = [1, 1]} : vector<8x256xf32> to vector<8x32xf32>
    %50 = vector.extract_strided_slice %48 {offsets = [0, 128], sizes = [8, 32], strides = [1, 1]} : vector<8x256xf32> to vector<8x32xf32>
    %51 = vector.extract_strided_slice %7 {offsets = [8, 256], sizes = [8, 32], strides = [1, 1]} : vector<64x384xf32> to vector<8x32xf32>
    %52 = vector.extract_strided_slice %38 {offsets = [0, 256], sizes = [8, 32], strides = [1, 1]} : vector<8x384xf32> to vector<8x32xf32>
    %53 = arith.addf %52, %10 : vector<8x32xf32>
    %54 = arith.mulf %49, %53 : vector<8x32xf32>
    %55 = arith.addf %51, %54 : vector<8x32xf32>
    %56 = math.tanh %55 : vector<8x32xf32>
    %cst_17 = arith.constant 1.000000e+00 : f32
    %57 = vector.broadcast %cst_17 : f32 to vector<8x32xf32>
    %58 = arith.subf %57, %50 : vector<8x32xf32>
    %59 = arith.mulf %58, %56 : vector<8x32xf32>
    %60 = arith.mulf %50, %36 : vector<8x32xf32>
    %61 = arith.addf %59, %60 : vector<8x32xf32>
    %c0_18 = arith.constant 0 : index
    %c0_19 = arith.constant 0 : index
    %62 = vector.load %arg1[%c0_18, %c0_19] : memref<136x384xf32, #tpu.memory_space<vmem>>, vector<32x384xf32>
    %cst_20 = arith.constant dense<0.000000e+00> : vector<8x384xf32>
    %63 = tpu.matmul %61, %62, %cst_20 {dimension_numbers = #tpu.dot_dimension_numbers<[1], [0], [0], [1], [0, 0, 1, 1], [], []>} : vector<8x32xf32>, vector<32x384xf32>, vector<8x384xf32> -> vector<8x384xf32>
    %64 = vector.extract_strided_slice %7 {offsets = [16, 0], sizes = [8, 256], strides = [1, 1]} : vector<64x384xf32> to vector<8x256xf32>
    %65 = vector.extract_strided_slice %63 {offsets = [0, 0], sizes = [8, 256], strides = [1, 1]} : vector<8x384xf32> to vector<8x256xf32>
    %66 = arith.addf %64, %65 : vector<8x256xf32>
    %cst_21 = arith.constant 5.000000e-01 : f32
    %67 = vector.broadcast %cst_21 : f32 to vector<8x256xf32>
    %68 = arith.mulf %67, %66 : vector<8x256xf32>
    %69 = math.tanh %68 : vector<8x256xf32>
    %cst_22 = arith.constant 1.000000e+00 : f32
    %70 = vector.broadcast %cst_22 : f32 to vector<8x256xf32>
    %71 = arith.addf %69, %70 : vector<8x256xf32>
    %cst_23 = arith.constant 5.000000e-01 : f32
    %72 = vector.broadcast %cst_23 : f32 to vector<8x256xf32>
    %73 = arith.mulf %72, %71 : vector<8x256xf32>
    %74 = vector.extract_strided_slice %73 {offsets = [0, 0], sizes = [8, 32], strides = [1, 1]} : vector<8x256xf32> to vector<8x32xf32>
    %75 = vector.extract_strided_slice %73 {offsets = [0, 128], sizes = [8, 32], strides = [1, 1]} : vector<8x256xf32> to vector<8x32xf32>
    %76 = vector.extract_strided_slice %7 {offsets = [16, 256], sizes = [8, 32], strides = [1, 1]} : vector<64x384xf32> to vector<8x32xf32>
    %77 = vector.extract_strided_slice %63 {offsets = [0, 256], sizes = [8, 32], strides = [1, 1]} : vector<8x384xf32> to vector<8x32xf32>
    %78 = arith.addf %77, %10 : vector<8x32xf32>
    %79 = arith.mulf %74, %78 : vector<8x32xf32>
    %80 = arith.addf %76, %79 : vector<8x32xf32>
    %81 = math.tanh %80 : vector<8x32xf32>
    %cst_24 = arith.constant 1.000000e+00 : f32
    %82 = vector.broadcast %cst_24 : f32 to vector<8x32xf32>
    %83 = arith.subf %82, %75 : vector<8x32xf32>
    %84 = arith.mulf %83, %81 : vector<8x32xf32>
    %85 = arith.mulf %75, %61 : vector<8x32xf32>
    %86 = arith.addf %84, %85 : vector<8x32xf32>
    %c0_25 = arith.constant 0 : index
    %c0_26 = arith.constant 0 : index
    %87 = vector.load %arg1[%c0_25, %c0_26] : memref<136x384xf32, #tpu.memory_space<vmem>>, vector<32x384xf32>
    %cst_27 = arith.constant dense<0.000000e+00> : vector<8x384xf32>
    %88 = tpu.matmul %86, %87, %cst_27 {dimension_numbers = #tpu.dot_dimension_numbers<[1], [0], [0], [1], [0, 0, 1, 1], [], []>} : vector<8x32xf32>, vector<32x384xf32>, vector<8x384xf32> -> vector<8x384xf32>
    %89 = vector.extract_strided_slice %7 {offsets = [24, 0], sizes = [8, 256], strides = [1, 1]} : vector<64x384xf32> to vector<8x256xf32>
    %90 = vector.extract_strided_slice %88 {offsets = [0, 0], sizes = [8, 256], strides = [1, 1]} : vector<8x384xf32> to vector<8x256xf32>
    %91 = arith.addf %89, %90 : vector<8x256xf32>
    %cst_28 = arith.constant 5.000000e-01 : f32
    %92 = vector.broadcast %cst_28 : f32 to vector<8x256xf32>
    %93 = arith.mulf %92, %91 : vector<8x256xf32>
    %94 = math.tanh %93 : vector<8x256xf32>
    %cst_29 = arith.constant 1.000000e+00 : f32
    %95 = vector.broadcast %cst_29 : f32 to vector<8x256xf32>
    %96 = arith.addf %94, %95 : vector<8x256xf32>
    %cst_30 = arith.constant 5.000000e-01 : f32
    %97 = vector.broadcast %cst_30 : f32 to vector<8x256xf32>
    %98 = arith.mulf %97, %96 : vector<8x256xf32>
    %99 = vector.extract_strided_slice %98 {offsets = [0, 0], sizes = [8, 32], strides = [1, 1]} : vector<8x256xf32> to vector<8x32xf32>
    %100 = vector.extract_strided_slice %98 {offsets = [0, 128], sizes = [8, 32], strides = [1, 1]} : vector<8x256xf32> to vector<8x32xf32>
    %101 = vector.extract_strided_slice %7 {offsets = [24, 256], sizes = [8, 32], strides = [1, 1]} : vector<64x384xf32> to vector<8x32xf32>
    %102 = vector.extract_strided_slice %88 {offsets = [0, 256], sizes = [8, 32], strides = [1, 1]} : vector<8x384xf32> to vector<8x32xf32>
    %103 = arith.addf %102, %10 : vector<8x32xf32>
    %104 = arith.mulf %99, %103 : vector<8x32xf32>
    %105 = arith.addf %101, %104 : vector<8x32xf32>
    %106 = math.tanh %105 : vector<8x32xf32>
    %cst_31 = arith.constant 1.000000e+00 : f32
    %107 = vector.broadcast %cst_31 : f32 to vector<8x32xf32>
    %108 = arith.subf %107, %100 : vector<8x32xf32>
    %109 = arith.mulf %108, %106 : vector<8x32xf32>
    %110 = arith.mulf %100, %86 : vector<8x32xf32>
    %111 = arith.addf %109, %110 : vector<8x32xf32>
    %c0_32 = arith.constant 0 : index
    %c0_33 = arith.constant 0 : index
    %112 = vector.load %arg1[%c0_32, %c0_33] : memref<136x384xf32, #tpu.memory_space<vmem>>, vector<32x384xf32>
    %cst_34 = arith.constant dense<0.000000e+00> : vector<8x384xf32>
    %113 = tpu.matmul %111, %112, %cst_34 {dimension_numbers = #tpu.dot_dimension_numbers<[1], [0], [0], [1], [0, 0, 1, 1], [], []>} : vector<8x32xf32>, vector<32x384xf32>, vector<8x384xf32> -> vector<8x384xf32>
    %114 = vector.extract_strided_slice %7 {offsets = [32, 0], sizes = [8, 256], strides = [1, 1]} : vector<64x384xf32> to vector<8x256xf32>
    %115 = vector.extract_strided_slice %113 {offsets = [0, 0], sizes = [8, 256], strides = [1, 1]} : vector<8x384xf32> to vector<8x256xf32>
    %116 = arith.addf %114, %115 : vector<8x256xf32>
    %cst_35 = arith.constant 5.000000e-01 : f32
    %117 = vector.broadcast %cst_35 : f32 to vector<8x256xf32>
    %118 = arith.mulf %117, %116 : vector<8x256xf32>
    %119 = math.tanh %118 : vector<8x256xf32>
    %cst_36 = arith.constant 1.000000e+00 : f32
    %120 = vector.broadcast %cst_36 : f32 to vector<8x256xf32>
    %121 = arith.addf %119, %120 : vector<8x256xf32>
    %cst_37 = arith.constant 5.000000e-01 : f32
    %122 = vector.broadcast %cst_37 : f32 to vector<8x256xf32>
    %123 = arith.mulf %122, %121 : vector<8x256xf32>
    %124 = vector.extract_strided_slice %123 {offsets = [0, 0], sizes = [8, 32], strides = [1, 1]} : vector<8x256xf32> to vector<8x32xf32>
    %125 = vector.extract_strided_slice %123 {offsets = [0, 128], sizes = [8, 32], strides = [1, 1]} : vector<8x256xf32> to vector<8x32xf32>
    %126 = vector.extract_strided_slice %7 {offsets = [32, 256], sizes = [8, 32], strides = [1, 1]} : vector<64x384xf32> to vector<8x32xf32>
    %127 = vector.extract_strided_slice %113 {offsets = [0, 256], sizes = [8, 32], strides = [1, 1]} : vector<8x384xf32> to vector<8x32xf32>
    %128 = arith.addf %127, %10 : vector<8x32xf32>
    %129 = arith.mulf %124, %128 : vector<8x32xf32>
    %130 = arith.addf %126, %129 : vector<8x32xf32>
    %131 = math.tanh %130 : vector<8x32xf32>
    %cst_38 = arith.constant 1.000000e+00 : f32
    %132 = vector.broadcast %cst_38 : f32 to vector<8x32xf32>
    %133 = arith.subf %132, %125 : vector<8x32xf32>
    %134 = arith.mulf %133, %131 : vector<8x32xf32>
    %135 = arith.mulf %125, %111 : vector<8x32xf32>
    %136 = arith.addf %134, %135 : vector<8x32xf32>
    %c0_39 = arith.constant 0 : index
    %c0_40 = arith.constant 0 : index
    %137 = vector.load %arg1[%c0_39, %c0_40] : memref<136x384xf32, #tpu.memory_space<vmem>>, vector<32x384xf32>
    %cst_41 = arith.constant dense<0.000000e+00> : vector<8x384xf32>
    %138 = tpu.matmul %136, %137, %cst_41 {dimension_numbers = #tpu.dot_dimension_numbers<[1], [0], [0], [1], [0, 0, 1, 1], [], []>} : vector<8x32xf32>, vector<32x384xf32>, vector<8x384xf32> -> vector<8x384xf32>
    %139 = vector.extract_strided_slice %7 {offsets = [40, 0], sizes = [8, 256], strides = [1, 1]} : vector<64x384xf32> to vector<8x256xf32>
    %140 = vector.extract_strided_slice %138 {offsets = [0, 0], sizes = [8, 256], strides = [1, 1]} : vector<8x384xf32> to vector<8x256xf32>
    %141 = arith.addf %139, %140 : vector<8x256xf32>
    %cst_42 = arith.constant 5.000000e-01 : f32
    %142 = vector.broadcast %cst_42 : f32 to vector<8x256xf32>
    %143 = arith.mulf %142, %141 : vector<8x256xf32>
    %144 = math.tanh %143 : vector<8x256xf32>
    %cst_43 = arith.constant 1.000000e+00 : f32
    %145 = vector.broadcast %cst_43 : f32 to vector<8x256xf32>
    %146 = arith.addf %144, %145 : vector<8x256xf32>
    %cst_44 = arith.constant 5.000000e-01 : f32
    %147 = vector.broadcast %cst_44 : f32 to vector<8x256xf32>
    %148 = arith.mulf %147, %146 : vector<8x256xf32>
    %149 = vector.extract_strided_slice %148 {offsets = [0, 0], sizes = [8, 32], strides = [1, 1]} : vector<8x256xf32> to vector<8x32xf32>
    %150 = vector.extract_strided_slice %148 {offsets = [0, 128], sizes = [8, 32], strides = [1, 1]} : vector<8x256xf32> to vector<8x32xf32>
    %151 = vector.extract_strided_slice %7 {offsets = [40, 256], sizes = [8, 32], strides = [1, 1]} : vector<64x384xf32> to vector<8x32xf32>
    %152 = vector.extract_strided_slice %138 {offsets = [0, 256], sizes = [8, 32], strides = [1, 1]} : vector<8x384xf32> to vector<8x32xf32>
    %153 = arith.addf %152, %10 : vector<8x32xf32>
    %154 = arith.mulf %149, %153 : vector<8x32xf32>
    %155 = arith.addf %151, %154 : vector<8x32xf32>
    %156 = math.tanh %155 : vector<8x32xf32>
    %cst_45 = arith.constant 1.000000e+00 : f32
    %157 = vector.broadcast %cst_45 : f32 to vector<8x32xf32>
    %158 = arith.subf %157, %150 : vector<8x32xf32>
    %159 = arith.mulf %158, %156 : vector<8x32xf32>
    %160 = arith.mulf %150, %136 : vector<8x32xf32>
    %161 = arith.addf %159, %160 : vector<8x32xf32>
    %c0_46 = arith.constant 0 : index
    %c0_47 = arith.constant 0 : index
    %162 = vector.load %arg1[%c0_46, %c0_47] : memref<136x384xf32, #tpu.memory_space<vmem>>, vector<32x384xf32>
    %cst_48 = arith.constant dense<0.000000e+00> : vector<8x384xf32>
    %163 = tpu.matmul %161, %162, %cst_48 {dimension_numbers = #tpu.dot_dimension_numbers<[1], [0], [0], [1], [0, 0, 1, 1], [], []>} : vector<8x32xf32>, vector<32x384xf32>, vector<8x384xf32> -> vector<8x384xf32>
    %164 = vector.extract_strided_slice %7 {offsets = [48, 0], sizes = [8, 256], strides = [1, 1]} : vector<64x384xf32> to vector<8x256xf32>
    %165 = vector.extract_strided_slice %163 {offsets = [0, 0], sizes = [8, 256], strides = [1, 1]} : vector<8x384xf32> to vector<8x256xf32>
    %166 = arith.addf %164, %165 : vector<8x256xf32>
    %cst_49 = arith.constant 5.000000e-01 : f32
    %167 = vector.broadcast %cst_49 : f32 to vector<8x256xf32>
    %168 = arith.mulf %167, %166 : vector<8x256xf32>
    %169 = math.tanh %168 : vector<8x256xf32>
    %cst_50 = arith.constant 1.000000e+00 : f32
    %170 = vector.broadcast %cst_50 : f32 to vector<8x256xf32>
    %171 = arith.addf %169, %170 : vector<8x256xf32>
    %cst_51 = arith.constant 5.000000e-01 : f32
    %172 = vector.broadcast %cst_51 : f32 to vector<8x256xf32>
    %173 = arith.mulf %172, %171 : vector<8x256xf32>
    %174 = vector.extract_strided_slice %173 {offsets = [0, 0], sizes = [8, 32], strides = [1, 1]} : vector<8x256xf32> to vector<8x32xf32>
    %175 = vector.extract_strided_slice %173 {offsets = [0, 128], sizes = [8, 32], strides = [1, 1]} : vector<8x256xf32> to vector<8x32xf32>
    %176 = vector.extract_strided_slice %7 {offsets = [48, 256], sizes = [8, 32], strides = [1, 1]} : vector<64x384xf32> to vector<8x32xf32>
    %177 = vector.extract_strided_slice %163 {offsets = [0, 256], sizes = [8, 32], strides = [1, 1]} : vector<8x384xf32> to vector<8x32xf32>
    %178 = arith.addf %177, %10 : vector<8x32xf32>
    %179 = arith.mulf %174, %178 : vector<8x32xf32>
    %180 = arith.addf %176, %179 : vector<8x32xf32>
    %181 = math.tanh %180 : vector<8x32xf32>
    %cst_52 = arith.constant 1.000000e+00 : f32
    %182 = vector.broadcast %cst_52 : f32 to vector<8x32xf32>
    %183 = arith.subf %182, %175 : vector<8x32xf32>
    %184 = arith.mulf %183, %181 : vector<8x32xf32>
    %185 = arith.mulf %175, %161 : vector<8x32xf32>
    %186 = arith.addf %184, %185 : vector<8x32xf32>
    %c0_53 = arith.constant 0 : index
    %c0_54 = arith.constant 0 : index
    %187 = vector.load %arg1[%c0_53, %c0_54] : memref<136x384xf32, #tpu.memory_space<vmem>>, vector<32x384xf32>
    %cst_55 = arith.constant dense<0.000000e+00> : vector<8x384xf32>
    %188 = tpu.matmul %186, %187, %cst_55 {dimension_numbers = #tpu.dot_dimension_numbers<[1], [0], [0], [1], [0, 0, 1, 1], [], []>} : vector<8x32xf32>, vector<32x384xf32>, vector<8x384xf32> -> vector<8x384xf32>
    %189 = vector.extract_strided_slice %7 {offsets = [56, 0], sizes = [8, 256], strides = [1, 1]} : vector<64x384xf32> to vector<8x256xf32>
    %190 = vector.extract_strided_slice %188 {offsets = [0, 0], sizes = [8, 256], strides = [1, 1]} : vector<8x384xf32> to vector<8x256xf32>
    %191 = arith.addf %189, %190 : vector<8x256xf32>
    %cst_56 = arith.constant 5.000000e-01 : f32
    %192 = vector.broadcast %cst_56 : f32 to vector<8x256xf32>
    %193 = arith.mulf %192, %191 : vector<8x256xf32>
    %194 = math.tanh %193 : vector<8x256xf32>
    %cst_57 = arith.constant 1.000000e+00 : f32
    %195 = vector.broadcast %cst_57 : f32 to vector<8x256xf32>
    %196 = arith.addf %194, %195 : vector<8x256xf32>
    %cst_58 = arith.constant 5.000000e-01 : f32
    %197 = vector.broadcast %cst_58 : f32 to vector<8x256xf32>
    %198 = arith.mulf %197, %196 : vector<8x256xf32>
    %199 = vector.extract_strided_slice %198 {offsets = [0, 0], sizes = [8, 32], strides = [1, 1]} : vector<8x256xf32> to vector<8x32xf32>
    %200 = vector.extract_strided_slice %198 {offsets = [0, 128], sizes = [8, 32], strides = [1, 1]} : vector<8x256xf32> to vector<8x32xf32>
    %201 = vector.extract_strided_slice %7 {offsets = [56, 256], sizes = [8, 32], strides = [1, 1]} : vector<64x384xf32> to vector<8x32xf32>
    %202 = vector.extract_strided_slice %188 {offsets = [0, 256], sizes = [8, 32], strides = [1, 1]} : vector<8x384xf32> to vector<8x32xf32>
    %203 = arith.addf %202, %10 : vector<8x32xf32>
    %204 = arith.mulf %199, %203 : vector<8x32xf32>
    %205 = arith.addf %201, %204 : vector<8x32xf32>
    %206 = math.tanh %205 : vector<8x32xf32>
    %cst_59 = arith.constant 1.000000e+00 : f32
    %207 = vector.broadcast %cst_59 : f32 to vector<8x32xf32>
    %208 = arith.subf %207, %200 : vector<8x32xf32>
    %209 = arith.mulf %208, %206 : vector<8x32xf32>
    %210 = arith.mulf %200, %186 : vector<8x32xf32>
    %211 = arith.addf %209, %210 : vector<8x32xf32>
    %212 = vector.extract_strided_slice %0 {offsets = [3, 128], sizes = [1, 32], strides = [1, 1]} : vector<8x384xf32> to vector<1x32xf32>
    %213 = vector.shape_cast %212 : vector<1x32xf32> to vector<1x32xf32>
    %214 = vector.broadcast %213 : vector<1x32xf32> to vector<8x32xf32>
    %215 = vector.extract_strided_slice %0 {offsets = [2, 0], sizes = [1, 384], strides = [1, 1]} : vector<8x384xf32> to vector<1x384xf32>
    %216 = vector.shape_cast %215 : vector<1x384xf32> to vector<1x384xf32>
    %217 = vector.broadcast %216 : vector<1x384xf32> to vector<8x384xf32>
    %218 = vector.extract_strided_slice %0 {offsets = [4, 0], sizes = [1, 4], strides = [1, 1]} : vector<8x384xf32> to vector<1x4xf32>
    %219 = vector.shape_cast %218 : vector<1x4xf32> to vector<1x4xf32>
    %220 = vector.broadcast %219 : vector<1x4xf32> to vector<8x4xf32>
    %c56 = arith.constant 56 : index
    %c0_60 = arith.constant 0 : index
    %221 = vector.load %arg0[%c56, %c0_60] : memref<64x4xf32, #tpu.memory_space<vmem>>, vector<8x4xf32>
    %c72 = arith.constant 72 : index
    %c0_61 = arith.constant 0 : index
    %222 = vector.load %arg1[%c72, %c0_61] : memref<136x384xf32, #tpu.memory_space<vmem>>, vector<4x384xf32>
    %cst_62 = arith.constant dense<0.000000e+00> : vector<8x384xf32>
    %223 = tpu.matmul %221, %222, %cst_62 {dimension_numbers = #tpu.dot_dimension_numbers<[1], [0], [0], [1], [0, 0, 1, 1], [], []>} : vector<8x4xf32>, vector<4x384xf32>, vector<8x384xf32> -> vector<8x384xf32>
    %224 = vector.extract_strided_slice %0 {offsets = [1, 0], sizes = [1, 384], strides = [1, 1]} : vector<8x384xf32> to vector<1x384xf32>
    %225 = vector.shape_cast %224 : vector<1x384xf32> to vector<1x384xf32>
    %226 = vector.broadcast %225 : vector<1x384xf32> to vector<8x384xf32>
    %227 = arith.addf %223, %226 : vector<8x384xf32>
    %c32 = arith.constant 32 : index
    %c0_63 = arith.constant 0 : index
    %228 = vector.load %arg1[%c32, %c0_63] : memref<136x384xf32, #tpu.memory_space<vmem>>, vector<32x384xf32>
    %cst_64 = arith.constant dense<0.000000e+00> : vector<8x384xf32>
    %229 = tpu.matmul %211, %228, %cst_64 {dimension_numbers = #tpu.dot_dimension_numbers<[1], [0], [0], [1], [0, 0, 1, 1], [], []>} : vector<8x32xf32>, vector<32x384xf32>, vector<8x384xf32> -> vector<8x384xf32>
    %230 = vector.extract_strided_slice %227 {offsets = [0, 0], sizes = [8, 256], strides = [1, 1]} : vector<8x384xf32> to vector<8x256xf32>
    %231 = vector.extract_strided_slice %229 {offsets = [0, 0], sizes = [8, 256], strides = [1, 1]} : vector<8x384xf32> to vector<8x256xf32>
    %232 = arith.addf %230, %231 : vector<8x256xf32>
    %cst_65 = arith.constant 5.000000e-01 : f32
    %233 = vector.broadcast %cst_65 : f32 to vector<8x256xf32>
    %234 = arith.mulf %233, %232 : vector<8x256xf32>
    %235 = math.tanh %234 : vector<8x256xf32>
    %cst_66 = arith.constant 1.000000e+00 : f32
    %236 = vector.broadcast %cst_66 : f32 to vector<8x256xf32>
    %237 = arith.addf %235, %236 : vector<8x256xf32>
    %cst_67 = arith.constant 5.000000e-01 : f32
    %238 = vector.broadcast %cst_67 : f32 to vector<8x256xf32>
    %239 = arith.mulf %238, %237 : vector<8x256xf32>
    %240 = vector.extract_strided_slice %239 {offsets = [0, 0], sizes = [8, 32], strides = [1, 1]} : vector<8x256xf32> to vector<8x32xf32>
    %241 = vector.extract_strided_slice %239 {offsets = [0, 128], sizes = [8, 32], strides = [1, 1]} : vector<8x256xf32> to vector<8x32xf32>
    %242 = vector.extract_strided_slice %227 {offsets = [0, 256], sizes = [8, 32], strides = [1, 1]} : vector<8x384xf32> to vector<8x32xf32>
    %243 = vector.extract_strided_slice %229 {offsets = [0, 256], sizes = [8, 32], strides = [1, 1]} : vector<8x384xf32> to vector<8x32xf32>
    %244 = arith.addf %243, %214 : vector<8x32xf32>
    %245 = arith.mulf %240, %244 : vector<8x32xf32>
    %246 = arith.addf %242, %245 : vector<8x32xf32>
    %247 = math.tanh %246 : vector<8x32xf32>
    %cst_68 = arith.constant 1.000000e+00 : f32
    %248 = vector.broadcast %cst_68 : f32 to vector<8x32xf32>
    %249 = arith.subf %248, %241 : vector<8x32xf32>
    %250 = arith.mulf %249, %247 : vector<8x32xf32>
    %251 = arith.mulf %241, %211 : vector<8x32xf32>
    %252 = arith.addf %250, %251 : vector<8x32xf32>
    %c88 = arith.constant 88 : index
    %c0_69 = arith.constant 0 : index
    %253 = vector.load %arg1[%c88, %c0_69] : memref<136x384xf32, #tpu.memory_space<vmem>>, vector<32x4xf32>
    %cst_70 = arith.constant dense<0.000000e+00> : vector<8x4xf32>
    %254 = tpu.matmul %252, %253, %cst_70 {dimension_numbers = #tpu.dot_dimension_numbers<[1], [0], [0], [1], [0, 0, 1, 1], [], []>} : vector<8x32xf32>, vector<32x4xf32>, vector<8x4xf32> -> vector<8x4xf32>
    %255 = arith.addf %254, %220 : vector<8x4xf32>
    %cst_71 = arith.constant 0.000000e+00 : f32
    %256 = vector.broadcast %cst_71 : f32 to vector<8x4xf32>
    %257 = arith.maximumf %255, %256 : vector<8x4xf32>
    %c0_72 = arith.constant 0 : index
    %c0_73 = arith.constant 0 : index
    %258 = vector.load %arg3[%c0_72, %c0_73] : memref<64x4xf32, #tpu.memory_space<vmem>>, vector<8x4xf32>
    tpu.vector_store %arg3[%c0_72, %c0_73], %257 {strides = array<i32>} : memref<64x4xf32, #tpu.memory_space<vmem>>, vector<8x4xf32>,
    %c80 = arith.constant 80 : index
    %c0_74 = arith.constant 0 : index
    %259 = vector.load %arg1[%c80, %c0_74] : memref<136x384xf32, #tpu.memory_space<vmem>>, vector<4x384xf32>
    %cst_75 = arith.constant dense<0.000000e+00> : vector<8x384xf32>
    %260 = tpu.matmul %257, %259, %cst_75 {dimension_numbers = #tpu.dot_dimension_numbers<[1], [0], [0], [1], [0, 0, 1, 1], [], []>} : vector<8x4xf32>, vector<4x384xf32>, vector<8x384xf32> -> vector<8x384xf32>
    %261 = arith.addf %260, %217 : vector<8x384xf32>
    %c32_76 = arith.constant 32 : index
    %c0_77 = arith.constant 0 : index
    %262 = vector.load %arg1[%c32_76, %c0_77] : memref<136x384xf32, #tpu.memory_space<vmem>>, vector<32x384xf32>
    %cst_78 = arith.constant dense<0.000000e+00> : vector<8x384xf32>
    %263 = tpu.matmul %252, %262, %cst_78 {dimension_numbers = #tpu.dot_dimension_numbers<[1], [0], [0], [1], [0, 0, 1, 1], [], []>} : vector<8x32xf32>, vector<32x384xf32>, vector<8x384xf32> -> vector<8x384xf32>
    %264 = vector.extract_strided_slice %261 {offsets = [0, 0], sizes = [8, 256], strides = [1, 1]} : vector<8x384xf32> to vector<8x256xf32>
    %265 = vector.extract_strided_slice %263 {offsets = [0, 0], sizes = [8, 256], strides = [1, 1]} : vector<8x384xf32> to vector<8x256xf32>
    %266 = arith.addf %264, %265 : vector<8x256xf32>
    %cst_79 = arith.constant 5.000000e-01 : f32
    %267 = vector.broadcast %cst_79 : f32 to vector<8x256xf32>
    %268 = arith.mulf %267, %266 : vector<8x256xf32>
    %269 = math.tanh %268 : vector<8x256xf32>
    %cst_80 = arith.constant 1.000000e+00 : f32
    %270 = vector.broadcast %cst_80 : f32 to vector<8x256xf32>
    %271 = arith.addf %269, %270 : vector<8x256xf32>
    %cst_81 = arith.constant 5.000000e-01 : f32
    %272 = vector.broadcast %cst_81 : f32 to vector<8x256xf32>
    %273 = arith.mulf %272, %271 : vector<8x256xf32>
    %274 = vector.extract_strided_slice %273 {offsets = [0, 0], sizes = [8, 32], strides = [1, 1]} : vector<8x256xf32> to vector<8x32xf32>
    %275 = vector.extract_strided_slice %273 {offsets = [0, 128], sizes = [8, 32], strides = [1, 1]} : vector<8x256xf32> to vector<8x32xf32>
    %276 = vector.extract_strided_slice %261 {offsets = [0, 256], sizes = [8, 32], strides = [1, 1]} : vector<8x384xf32> to vector<8x32xf32>
    %277 = vector.extract_strided_slice %263 {offsets = [0, 256], sizes = [8, 32], strides = [1, 1]} : vector<8x384xf32> to vector<8x32xf32>
    %278 = arith.addf %277, %214 : vector<8x32xf32>
    %279 = arith.mulf %274, %278 : vector<8x32xf32>
    %280 = arith.addf %276, %279 : vector<8x32xf32>
    %281 = math.tanh %280 : vector<8x32xf32>
    %cst_82 = arith.constant 1.000000e+00 : f32
    %282 = vector.broadcast %cst_82 : f32 to vector<8x32xf32>
    %283 = arith.subf %282, %275 : vector<8x32xf32>
    %284 = arith.mulf %283, %281 : vector<8x32xf32>
    %285 = arith.mulf %275, %252 : vector<8x32xf32>
    %286 = arith.addf %284, %285 : vector<8x32xf32>
    %c88_83 = arith.constant 88 : index
    %c0_84 = arith.constant 0 : index
    %287 = vector.load %arg1[%c88_83, %c0_84] : memref<136x384xf32, #tpu.memory_space<vmem>>, vector<32x4xf32>
    %cst_85 = arith.constant dense<0.000000e+00> : vector<8x4xf32>
    %288 = tpu.matmul %286, %287, %cst_85 {dimension_numbers = #tpu.dot_dimension_numbers<[1], [0], [0], [1], [0, 0, 1, 1], [], []>} : vector<8x32xf32>, vector<32x4xf32>, vector<8x4xf32> -> vector<8x4xf32>
    %289 = arith.addf %288, %220 : vector<8x4xf32>
    %cst_86 = arith.constant 0.000000e+00 : f32
    %290 = vector.broadcast %cst_86 : f32 to vector<8x4xf32>
    %291 = arith.maximumf %289, %290 : vector<8x4xf32>
    %c8 = arith.constant 8 : index
    %c0_87 = arith.constant 0 : index
    %292 = vector.load %arg3[%c8, %c0_87] : memref<64x4xf32, #tpu.memory_space<vmem>>, vector<8x4xf32>
    tpu.vector_store %arg3[%c8, %c0_87], %291 {strides = array<i32>} : memref<64x4xf32, #tpu.memory_space<vmem>>, vector<8x4xf32>,
    %c80_88 = arith.constant 80 : index
    %c0_89 = arith.constant 0 : index
    %293 = vector.load %arg1[%c80_88, %c0_89] : memref<136x384xf32, #tpu.memory_space<vmem>>, vector<4x384xf32>
    %cst_90 = arith.constant dense<0.000000e+00> : vector<8x384xf32>
    %294 = tpu.matmul %291, %293, %cst_90 {dimension_numbers = #tpu.dot_dimension_numbers<[1], [0], [0], [1], [0, 0, 1, 1], [], []>} : vector<8x4xf32>, vector<4x384xf32>, vector<8x384xf32> -> vector<8x384xf32>
    %295 = arith.addf %294, %217 : vector<8x384xf32>
    %c32_91 = arith.constant 32 : index
    %c0_92 = arith.constant 0 : index
    %296 = vector.load %arg1[%c32_91, %c0_92] : memref<136x384xf32, #tpu.memory_space<vmem>>, vector<32x384xf32>
    %cst_93 = arith.constant dense<0.000000e+00> : vector<8x384xf32>
    %297 = tpu.matmul %286, %296, %cst_93 {dimension_numbers = #tpu.dot_dimension_numbers<[1], [0], [0], [1], [0, 0, 1, 1], [], []>} : vector<8x32xf32>, vector<32x384xf32>, vector<8x384xf32> -> vector<8x384xf32>
    %298 = vector.extract_strided_slice %295 {offsets = [0, 0], sizes = [8, 256], strides = [1, 1]} : vector<8x384xf32> to vector<8x256xf32>
    %299 = vector.extract_strided_slice %297 {offsets = [0, 0], sizes = [8, 256], strides = [1, 1]} : vector<8x384xf32> to vector<8x256xf32>
    %300 = arith.addf %298, %299 : vector<8x256xf32>
    %cst_94 = arith.constant 5.000000e-01 : f32
    %301 = vector.broadcast %cst_94 : f32 to vector<8x256xf32>
    %302 = arith.mulf %301, %300 : vector<8x256xf32>
    %303 = math.tanh %302 : vector<8x256xf32>
    %cst_95 = arith.constant 1.000000e+00 : f32
    %304 = vector.broadcast %cst_95 : f32 to vector<8x256xf32>
    %305 = arith.addf %303, %304 : vector<8x256xf32>
    %cst_96 = arith.constant 5.000000e-01 : f32
    %306 = vector.broadcast %cst_96 : f32 to vector<8x256xf32>
    %307 = arith.mulf %306, %305 : vector<8x256xf32>
    %308 = vector.extract_strided_slice %307 {offsets = [0, 0], sizes = [8, 32], strides = [1, 1]} : vector<8x256xf32> to vector<8x32xf32>
    %309 = vector.extract_strided_slice %307 {offsets = [0, 128], sizes = [8, 32], strides = [1, 1]} : vector<8x256xf32> to vector<8x32xf32>
    %310 = vector.extract_strided_slice %295 {offsets = [0, 256], sizes = [8, 32], strides = [1, 1]} : vector<8x384xf32> to vector<8x32xf32>
    %311 = vector.extract_strided_slice %297 {offsets = [0, 256], sizes = [8, 32], strides = [1, 1]} : vector<8x384xf32> to vector<8x32xf32>
    %312 = arith.addf %311, %214 : vector<8x32xf32>
    %313 = arith.mulf %308, %312 : vector<8x32xf32>
    %314 = arith.addf %310, %313 : vector<8x32xf32>
    %315 = math.tanh %314 : vector<8x32xf32>
    %cst_97 = arith.constant 1.000000e+00 : f32
    %316 = vector.broadcast %cst_97 : f32 to vector<8x32xf32>
    %317 = arith.subf %316, %309 : vector<8x32xf32>
    %318 = arith.mulf %317, %315 : vector<8x32xf32>
    %319 = arith.mulf %309, %286 : vector<8x32xf32>
    %320 = arith.addf %318, %319 : vector<8x32xf32>
    %c88_98 = arith.constant 88 : index
    %c0_99 = arith.constant 0 : index
    %321 = vector.load %arg1[%c88_98, %c0_99] : memref<136x384xf32, #tpu.memory_space<vmem>>, vector<32x4xf32>
    %cst_100 = arith.constant dense<0.000000e+00> : vector<8x4xf32>
    %322 = tpu.matmul %320, %321, %cst_100 {dimension_numbers = #tpu.dot_dimension_numbers<[1], [0], [0], [1], [0, 0, 1, 1], [], []>} : vector<8x32xf32>, vector<32x4xf32>, vector<8x4xf32> -> vector<8x4xf32>
    %323 = arith.addf %322, %220 : vector<8x4xf32>
    %cst_101 = arith.constant 0.000000e+00 : f32
    %324 = vector.broadcast %cst_101 : f32 to vector<8x4xf32>
    %325 = arith.maximumf %323, %324 : vector<8x4xf32>
    %c16 = arith.constant 16 : index
    %c0_102 = arith.constant 0 : index
    %326 = vector.load %arg3[%c16, %c0_102] : memref<64x4xf32, #tpu.memory_space<vmem>>, vector<8x4xf32>
    tpu.vector_store %arg3[%c16, %c0_102], %325 {strides = array<i32>} : memref<64x4xf32, #tpu.memory_space<vmem>>, vector<8x4xf32>,
    %c80_103 = arith.constant 80 : index
    %c0_104 = arith.constant 0 : index
    %327 = vector.load %arg1[%c80_103, %c0_104] : memref<136x384xf32, #tpu.memory_space<vmem>>, vector<4x384xf32>
    %cst_105 = arith.constant dense<0.000000e+00> : vector<8x384xf32>
    %328 = tpu.matmul %325, %327, %cst_105 {dimension_numbers = #tpu.dot_dimension_numbers<[1], [0], [0], [1], [0, 0, 1, 1], [], []>} : vector<8x4xf32>, vector<4x384xf32>, vector<8x384xf32> -> vector<8x384xf32>
    %329 = arith.addf %328, %217 : vector<8x384xf32>
    %c32_106 = arith.constant 32 : index
    %c0_107 = arith.constant 0 : index
    %330 = vector.load %arg1[%c32_106, %c0_107] : memref<136x384xf32, #tpu.memory_space<vmem>>, vector<32x384xf32>
    %cst_108 = arith.constant dense<0.000000e+00> : vector<8x384xf32>
    %331 = tpu.matmul %320, %330, %cst_108 {dimension_numbers = #tpu.dot_dimension_numbers<[1], [0], [0], [1], [0, 0, 1, 1], [], []>} : vector<8x32xf32>, vector<32x384xf32>, vector<8x384xf32> -> vector<8x384xf32>
    %332 = vector.extract_strided_slice %329 {offsets = [0, 0], sizes = [8, 256], strides = [1, 1]} : vector<8x384xf32> to vector<8x256xf32>
    %333 = vector.extract_strided_slice %331 {offsets = [0, 0], sizes = [8, 256], strides = [1, 1]} : vector<8x384xf32> to vector<8x256xf32>
    %334 = arith.addf %332, %333 : vector<8x256xf32>
    %cst_109 = arith.constant 5.000000e-01 : f32
    %335 = vector.broadcast %cst_109 : f32 to vector<8x256xf32>
    %336 = arith.mulf %335, %334 : vector<8x256xf32>
    %337 = math.tanh %336 : vector<8x256xf32>
    %cst_110 = arith.constant 1.000000e+00 : f32
    %338 = vector.broadcast %cst_110 : f32 to vector<8x256xf32>
    %339 = arith.addf %337, %338 : vector<8x256xf32>
    %cst_111 = arith.constant 5.000000e-01 : f32
    %340 = vector.broadcast %cst_111 : f32 to vector<8x256xf32>
    %341 = arith.mulf %340, %339 : vector<8x256xf32>
    %342 = vector.extract_strided_slice %341 {offsets = [0, 0], sizes = [8, 32], strides = [1, 1]} : vector<8x256xf32> to vector<8x32xf32>
    %343 = vector.extract_strided_slice %341 {offsets = [0, 128], sizes = [8, 32], strides = [1, 1]} : vector<8x256xf32> to vector<8x32xf32>
    %344 = vector.extract_strided_slice %329 {offsets = [0, 256], sizes = [8, 32], strides = [1, 1]} : vector<8x384xf32> to vector<8x32xf32>
    %345 = vector.extract_strided_slice %331 {offsets = [0, 256], sizes = [8, 32], strides = [1, 1]} : vector<8x384xf32> to vector<8x32xf32>
    %346 = arith.addf %345, %214 : vector<8x32xf32>
    %347 = arith.mulf %342, %346 : vector<8x32xf32>
    %348 = arith.addf %344, %347 : vector<8x32xf32>
    %349 = math.tanh %348 : vector<8x32xf32>
    %cst_112 = arith.constant 1.000000e+00 : f32
    %350 = vector.broadcast %cst_112 : f32 to vector<8x32xf32>
    %351 = arith.subf %350, %343 : vector<8x32xf32>
    %352 = arith.mulf %351, %349 : vector<8x32xf32>
    %353 = arith.mulf %343, %320 : vector<8x32xf32>
    %354 = arith.addf %352, %353 : vector<8x32xf32>
    %c88_113 = arith.constant 88 : index
    %c0_114 = arith.constant 0 : index
    %355 = vector.load %arg1[%c88_113, %c0_114] : memref<136x384xf32, #tpu.memory_space<vmem>>, vector<32x4xf32>
    %cst_115 = arith.constant dense<0.000000e+00> : vector<8x4xf32>
    %356 = tpu.matmul %354, %355, %cst_115 {dimension_numbers = #tpu.dot_dimension_numbers<[1], [0], [0], [1], [0, 0, 1, 1], [], []>} : vector<8x32xf32>, vector<32x4xf32>, vector<8x4xf32> -> vector<8x4xf32>
    %357 = arith.addf %356, %220 : vector<8x4xf32>
    %cst_116 = arith.constant 0.000000e+00 : f32
    %358 = vector.broadcast %cst_116 : f32 to vector<8x4xf32>
    %359 = arith.maximumf %357, %358 : vector<8x4xf32>
    %c24 = arith.constant 24 : index
    %c0_117 = arith.constant 0 : index
    %360 = vector.load %arg3[%c24, %c0_117] : memref<64x4xf32, #tpu.memory_space<vmem>>, vector<8x4xf32>
    tpu.vector_store %arg3[%c24, %c0_117], %359 {strides = array<i32>} : memref<64x4xf32, #tpu.memory_space<vmem>>, vector<8x4xf32>,
    %c80_118 = arith.constant 80 : index
    %c0_119 = arith.constant 0 : index
    %361 = vector.load %arg1[%c80_118, %c0_119] : memref<136x384xf32, #tpu.memory_space<vmem>>, vector<4x384xf32>
    %cst_120 = arith.constant dense<0.000000e+00> : vector<8x384xf32>
    %362 = tpu.matmul %359, %361, %cst_120 {dimension_numbers = #tpu.dot_dimension_numbers<[1], [0], [0], [1], [0, 0, 1, 1], [], []>} : vector<8x4xf32>, vector<4x384xf32>, vector<8x384xf32> -> vector<8x384xf32>
    %363 = arith.addf %362, %217 : vector<8x384xf32>
    %c32_121 = arith.constant 32 : index
    %c0_122 = arith.constant 0 : index
    %364 = vector.load %arg1[%c32_121, %c0_122] : memref<136x384xf32, #tpu.memory_space<vmem>>, vector<32x384xf32>
    %cst_123 = arith.constant dense<0.000000e+00> : vector<8x384xf32>
    %365 = tpu.matmul %354, %364, %cst_123 {dimension_numbers = #tpu.dot_dimension_numbers<[1], [0], [0], [1], [0, 0, 1, 1], [], []>} : vector<8x32xf32>, vector<32x384xf32>, vector<8x384xf32> -> vector<8x384xf32>
    %366 = vector.extract_strided_slice %363 {offsets = [0, 0], sizes = [8, 256], strides = [1, 1]} : vector<8x384xf32> to vector<8x256xf32>
    %367 = vector.extract_strided_slice %365 {offsets = [0, 0], sizes = [8, 256], strides = [1, 1]} : vector<8x384xf32> to vector<8x256xf32>
    %368 = arith.addf %366, %367 : vector<8x256xf32>
    %cst_124 = arith.constant 5.000000e-01 : f32
    %369 = vector.broadcast %cst_124 : f32 to vector<8x256xf32>
    %370 = arith.mulf %369, %368 : vector<8x256xf32>
    %371 = math.tanh %370 : vector<8x256xf32>
    %cst_125 = arith.constant 1.000000e+00 : f32
    %372 = vector.broadcast %cst_125 : f32 to vector<8x256xf32>
    %373 = arith.addf %371, %372 : vector<8x256xf32>
    %cst_126 = arith.constant 5.000000e-01 : f32
    %374 = vector.broadcast %cst_126 : f32 to vector<8x256xf32>
    %375 = arith.mulf %374, %373 : vector<8x256xf32>
    %376 = vector.extract_strided_slice %375 {offsets = [0, 0], sizes = [8, 32], strides = [1, 1]} : vector<8x256xf32> to vector<8x32xf32>
    %377 = vector.extract_strided_slice %375 {offsets = [0, 128], sizes = [8, 32], strides = [1, 1]} : vector<8x256xf32> to vector<8x32xf32>
    %378 = vector.extract_strided_slice %363 {offsets = [0, 256], sizes = [8, 32], strides = [1, 1]} : vector<8x384xf32> to vector<8x32xf32>
    %379 = vector.extract_strided_slice %365 {offsets = [0, 256], sizes = [8, 32], strides = [1, 1]} : vector<8x384xf32> to vector<8x32xf32>
    %380 = arith.addf %379, %214 : vector<8x32xf32>
    %381 = arith.mulf %376, %380 : vector<8x32xf32>
    %382 = arith.addf %378, %381 : vector<8x32xf32>
    %383 = math.tanh %382 : vector<8x32xf32>
    %cst_127 = arith.constant 1.000000e+00 : f32
    %384 = vector.broadcast %cst_127 : f32 to vector<8x32xf32>
    %385 = arith.subf %384, %377 : vector<8x32xf32>
    %386 = arith.mulf %385, %383 : vector<8x32xf32>
    %387 = arith.mulf %377, %354 : vector<8x32xf32>
    %388 = arith.addf %386, %387 : vector<8x32xf32>
    %c88_128 = arith.constant 88 : index
    %c0_129 = arith.constant 0 : index
    %389 = vector.load %arg1[%c88_128, %c0_129] : memref<136x384xf32, #tpu.memory_space<vmem>>, vector<32x4xf32>
    %cst_130 = arith.constant dense<0.000000e+00> : vector<8x4xf32>
    %390 = tpu.matmul %388, %389, %cst_130 {dimension_numbers = #tpu.dot_dimension_numbers<[1], [0], [0], [1], [0, 0, 1, 1], [], []>} : vector<8x32xf32>, vector<32x4xf32>, vector<8x4xf32> -> vector<8x4xf32>
    %391 = arith.addf %390, %220 : vector<8x4xf32>
    %cst_131 = arith.constant 0.000000e+00 : f32
    %392 = vector.broadcast %cst_131 : f32 to vector<8x4xf32>
    %393 = arith.maximumf %391, %392 : vector<8x4xf32>
    %c32_132 = arith.constant 32 : index
    %c0_133 = arith.constant 0 : index
    %394 = vector.load %arg3[%c32_132, %c0_133] : memref<64x4xf32, #tpu.memory_space<vmem>>, vector<8x4xf32>
    tpu.vector_store %arg3[%c32_132, %c0_133], %393 {strides = array<i32>} : memref<64x4xf32, #tpu.memory_space<vmem>>, vector<8x4xf32>,
    %c80_134 = arith.constant 80 : index
    %c0_135 = arith.constant 0 : index
    %395 = vector.load %arg1[%c80_134, %c0_135] : memref<136x384xf32, #tpu.memory_space<vmem>>, vector<4x384xf32>
    %cst_136 = arith.constant dense<0.000000e+00> : vector<8x384xf32>
    %396 = tpu.matmul %393, %395, %cst_136 {dimension_numbers = #tpu.dot_dimension_numbers<[1], [0], [0], [1], [0, 0, 1, 1], [], []>} : vector<8x4xf32>, vector<4x384xf32>, vector<8x384xf32> -> vector<8x384xf32>
    %397 = arith.addf %396, %217 : vector<8x384xf32>
    %c32_137 = arith.constant 32 : index
    %c0_138 = arith.constant 0 : index
    %398 = vector.load %arg1[%c32_137, %c0_138] : memref<136x384xf32, #tpu.memory_space<vmem>>, vector<32x384xf32>
    %cst_139 = arith.constant dense<0.000000e+00> : vector<8x384xf32>
    %399 = tpu.matmul %388, %398, %cst_139 {dimension_numbers = #tpu.dot_dimension_numbers<[1], [0], [0], [1], [0, 0, 1, 1], [], []>} : vector<8x32xf32>, vector<32x384xf32>, vector<8x384xf32> -> vector<8x384xf32>
    %400 = vector.extract_strided_slice %397 {offsets = [0, 0], sizes = [8, 256], strides = [1, 1]} : vector<8x384xf32> to vector<8x256xf32>
    %401 = vector.extract_strided_slice %399 {offsets = [0, 0], sizes = [8, 256], strides = [1, 1]} : vector<8x384xf32> to vector<8x256xf32>
    %402 = arith.addf %400, %401 : vector<8x256xf32>
    %cst_140 = arith.constant 5.000000e-01 : f32
    %403 = vector.broadcast %cst_140 : f32 to vector<8x256xf32>
    %404 = arith.mulf %403, %402 : vector<8x256xf32>
    %405 = math.tanh %404 : vector<8x256xf32>
    %cst_141 = arith.constant 1.000000e+00 : f32
    %406 = vector.broadcast %cst_141 : f32 to vector<8x256xf32>
    %407 = arith.addf %405, %406 : vector<8x256xf32>
    %cst_142 = arith.constant 5.000000e-01 : f32
    %408 = vector.broadcast %cst_142 : f32 to vector<8x256xf32>
    %409 = arith.mulf %408, %407 : vector<8x256xf32>
    %410 = vector.extract_strided_slice %409 {offsets = [0, 0], sizes = [8, 32], strides = [1, 1]} : vector<8x256xf32> to vector<8x32xf32>
    %411 = vector.extract_strided_slice %409 {offsets = [0, 128], sizes = [8, 32], strides = [1, 1]} : vector<8x256xf32> to vector<8x32xf32>
    %412 = vector.extract_strided_slice %397 {offsets = [0, 256], sizes = [8, 32], strides = [1, 1]} : vector<8x384xf32> to vector<8x32xf32>
    %413 = vector.extract_strided_slice %399 {offsets = [0, 256], sizes = [8, 32], strides = [1, 1]} : vector<8x384xf32> to vector<8x32xf32>
    %414 = arith.addf %413, %214 : vector<8x32xf32>
    %415 = arith.mulf %410, %414 : vector<8x32xf32>
    %416 = arith.addf %412, %415 : vector<8x32xf32>
    %417 = math.tanh %416 : vector<8x32xf32>
    %cst_143 = arith.constant 1.000000e+00 : f32
    %418 = vector.broadcast %cst_143 : f32 to vector<8x32xf32>
    %419 = arith.subf %418, %411 : vector<8x32xf32>
    %420 = arith.mulf %419, %417 : vector<8x32xf32>
    %421 = arith.mulf %411, %388 : vector<8x32xf32>
    %422 = arith.addf %420, %421 : vector<8x32xf32>
    %c88_144 = arith.constant 88 : index
    %c0_145 = arith.constant 0 : index
    %423 = vector.load %arg1[%c88_144, %c0_145] : memref<136x384xf32, #tpu.memory_space<vmem>>, vector<32x4xf32>
    %cst_146 = arith.constant dense<0.000000e+00> : vector<8x4xf32>
    %424 = tpu.matmul %422, %423, %cst_146 {dimension_numbers = #tpu.dot_dimension_numbers<[1], [0], [0], [1], [0, 0, 1, 1], [], []>} : vector<8x32xf32>, vector<32x4xf32>, vector<8x4xf32> -> vector<8x4xf32>
    %425 = arith.addf %424, %220 : vector<8x4xf32>
    %cst_147 = arith.constant 0.000000e+00 : f32
    %426 = vector.broadcast %cst_147 : f32 to vector<8x4xf32>
    %427 = arith.maximumf %425, %426 : vector<8x4xf32>
    %c40 = arith.constant 40 : index
    %c0_148 = arith.constant 0 : index
    %428 = vector.load %arg3[%c40, %c0_148] : memref<64x4xf32, #tpu.memory_space<vmem>>, vector<8x4xf32>
    tpu.vector_store %arg3[%c40, %c0_148], %427 {strides = array<i32>} : memref<64x4xf32, #tpu.memory_space<vmem>>, vector<8x4xf32>,
    %c80_149 = arith.constant 80 : index
    %c0_150 = arith.constant 0 : index
    %429 = vector.load %arg1[%c80_149, %c0_150] : memref<136x384xf32, #tpu.memory_space<vmem>>, vector<4x384xf32>
    %cst_151 = arith.constant dense<0.000000e+00> : vector<8x384xf32>
    %430 = tpu.matmul %427, %429, %cst_151 {dimension_numbers = #tpu.dot_dimension_numbers<[1], [0], [0], [1], [0, 0, 1, 1], [], []>} : vector<8x4xf32>, vector<4x384xf32>, vector<8x384xf32> -> vector<8x384xf32>
    %431 = arith.addf %430, %217 : vector<8x384xf32>
    %c32_152 = arith.constant 32 : index
    %c0_153 = arith.constant 0 : index
    %432 = vector.load %arg1[%c32_152, %c0_153] : memref<136x384xf32, #tpu.memory_space<vmem>>, vector<32x384xf32>
    %cst_154 = arith.constant dense<0.000000e+00> : vector<8x384xf32>
    %433 = tpu.matmul %422, %432, %cst_154 {dimension_numbers = #tpu.dot_dimension_numbers<[1], [0], [0], [1], [0, 0, 1, 1], [], []>} : vector<8x32xf32>, vector<32x384xf32>, vector<8x384xf32> -> vector<8x384xf32>
    %434 = vector.extract_strided_slice %431 {offsets = [0, 0], sizes = [8, 256], strides = [1, 1]} : vector<8x384xf32> to vector<8x256xf32>
    %435 = vector.extract_strided_slice %433 {offsets = [0, 0], sizes = [8, 256], strides = [1, 1]} : vector<8x384xf32> to vector<8x256xf32>
    %436 = arith.addf %434, %435 : vector<8x256xf32>
    %cst_155 = arith.constant 5.000000e-01 : f32
    %437 = vector.broadcast %cst_155 : f32 to vector<8x256xf32>
    %438 = arith.mulf %437, %436 : vector<8x256xf32>
    %439 = math.tanh %438 : vector<8x256xf32>
    %cst_156 = arith.constant 1.000000e+00 : f32
    %440 = vector.broadcast %cst_156 : f32 to vector<8x256xf32>
    %441 = arith.addf %439, %440 : vector<8x256xf32>
    %cst_157 = arith.constant 5.000000e-01 : f32
    %442 = vector.broadcast %cst_157 : f32 to vector<8x256xf32>
    %443 = arith.mulf %442, %441 : vector<8x256xf32>
    %444 = vector.extract_strided_slice %443 {offsets = [0, 0], sizes = [8, 32], strides = [1, 1]} : vector<8x256xf32> to vector<8x32xf32>
    %445 = vector.extract_strided_slice %443 {offsets = [0, 128], sizes = [8, 32], strides = [1, 1]} : vector<8x256xf32> to vector<8x32xf32>
    %446 = vector.extract_strided_slice %431 {offsets = [0, 256], sizes = [8, 32], strides = [1, 1]} : vector<8x384xf32> to vector<8x32xf32>
    %447 = vector.extract_strided_slice %433 {offsets = [0, 256], sizes = [8, 32], strides = [1, 1]} : vector<8x384xf32> to vector<8x32xf32>
    %448 = arith.addf %447, %214 : vector<8x32xf32>
    %449 = arith.mulf %444, %448 : vector<8x32xf32>
    %450 = arith.addf %446, %449 : vector<8x32xf32>
    %451 = math.tanh %450 : vector<8x32xf32>
    %cst_158 = arith.constant 1.000000e+00 : f32
    %452 = vector.broadcast %cst_158 : f32 to vector<8x32xf32>
    %453 = arith.subf %452, %445 : vector<8x32xf32>
    %454 = arith.mulf %453, %451 : vector<8x32xf32>
    %455 = arith.mulf %445, %422 : vector<8x32xf32>
    %456 = arith.addf %454, %455 : vector<8x32xf32>
    %c88_159 = arith.constant 88 : index
    %c0_160 = arith.constant 0 : index
    %457 = vector.load %arg1[%c88_159, %c0_160] : memref<136x384xf32, #tpu.memory_space<vmem>>, vector<32x4xf32>
    %cst_161 = arith.constant dense<0.000000e+00> : vector<8x4xf32>
    %458 = tpu.matmul %456, %457, %cst_161 {dimension_numbers = #tpu.dot_dimension_numbers<[1], [0], [0], [1], [0, 0, 1, 1], [], []>} : vector<8x32xf32>, vector<32x4xf32>, vector<8x4xf32> -> vector<8x4xf32>
    %459 = arith.addf %458, %220 : vector<8x4xf32>
    %cst_162 = arith.constant 0.000000e+00 : f32
    %460 = vector.broadcast %cst_162 : f32 to vector<8x4xf32>
    %461 = arith.maximumf %459, %460 : vector<8x4xf32>
    %c48 = arith.constant 48 : index
    %c0_163 = arith.constant 0 : index
    %462 = vector.load %arg3[%c48, %c0_163] : memref<64x4xf32, #tpu.memory_space<vmem>>, vector<8x4xf32>
    tpu.vector_store %arg3[%c48, %c0_163], %461 {strides = array<i32>} : memref<64x4xf32, #tpu.memory_space<vmem>>, vector<8x4xf32>,
    %c80_164 = arith.constant 80 : index
    %c0_165 = arith.constant 0 : index
    %463 = vector.load %arg1[%c80_164, %c0_165] : memref<136x384xf32, #tpu.memory_space<vmem>>, vector<4x384xf32>
    %cst_166 = arith.constant dense<0.000000e+00> : vector<8x384xf32>
    %464 = tpu.matmul %461, %463, %cst_166 {dimension_numbers = #tpu.dot_dimension_numbers<[1], [0], [0], [1], [0, 0, 1, 1], [], []>} : vector<8x4xf32>, vector<4x384xf32>, vector<8x384xf32> -> vector<8x384xf32>
    %465 = arith.addf %464, %217 : vector<8x384xf32>
    %c32_167 = arith.constant 32 : index
    %c0_168 = arith.constant 0 : index
    %466 = vector.load %arg1[%c32_167, %c0_168] : memref<136x384xf32, #tpu.memory_space<vmem>>, vector<32x384xf32>
    %cst_169 = arith.constant dense<0.000000e+00> : vector<8x384xf32>
    %467 = tpu.matmul %456, %466, %cst_169 {dimension_numbers = #tpu.dot_dimension_numbers<[1], [0], [0], [1], [0, 0, 1, 1], [], []>} : vector<8x32xf32>, vector<32x384xf32>, vector<8x384xf32> -> vector<8x384xf32>
    %468 = vector.extract_strided_slice %465 {offsets = [0, 0], sizes = [8, 256], strides = [1, 1]} : vector<8x384xf32> to vector<8x256xf32>
    %469 = vector.extract_strided_slice %467 {offsets = [0, 0], sizes = [8, 256], strides = [1, 1]} : vector<8x384xf32> to vector<8x256xf32>
    %470 = arith.addf %468, %469 : vector<8x256xf32>
    %cst_170 = arith.constant 5.000000e-01 : f32
    %471 = vector.broadcast %cst_170 : f32 to vector<8x256xf32>
    %472 = arith.mulf %471, %470 : vector<8x256xf32>
    %473 = math.tanh %472 : vector<8x256xf32>
    %cst_171 = arith.constant 1.000000e+00 : f32
    %474 = vector.broadcast %cst_171 : f32 to vector<8x256xf32>
    %475 = arith.addf %473, %474 : vector<8x256xf32>
    %cst_172 = arith.constant 5.000000e-01 : f32
    %476 = vector.broadcast %cst_172 : f32 to vector<8x256xf32>
    %477 = arith.mulf %476, %475 : vector<8x256xf32>
    %478 = vector.extract_strided_slice %477 {offsets = [0, 0], sizes = [8, 32], strides = [1, 1]} : vector<8x256xf32> to vector<8x32xf32>
    %479 = vector.extract_strided_slice %477 {offsets = [0, 128], sizes = [8, 32], strides = [1, 1]} : vector<8x256xf32> to vector<8x32xf32>
    %480 = vector.extract_strided_slice %465 {offsets = [0, 256], sizes = [8, 32], strides = [1, 1]} : vector<8x384xf32> to vector<8x32xf32>
    %481 = vector.extract_strided_slice %467 {offsets = [0, 256], sizes = [8, 32], strides = [1, 1]} : vector<8x384xf32> to vector<8x32xf32>
    %482 = arith.addf %481, %214 : vector<8x32xf32>
    %483 = arith.mulf %478, %482 : vector<8x32xf32>
    %484 = arith.addf %480, %483 : vector<8x32xf32>
    %485 = math.tanh %484 : vector<8x32xf32>
    %cst_173 = arith.constant 1.000000e+00 : f32
    %486 = vector.broadcast %cst_173 : f32 to vector<8x32xf32>
    %487 = arith.subf %486, %479 : vector<8x32xf32>
    %488 = arith.mulf %487, %485 : vector<8x32xf32>
    %489 = arith.mulf %479, %456 : vector<8x32xf32>
    %490 = arith.addf %488, %489 : vector<8x32xf32>
    %c88_174 = arith.constant 88 : index
    %c0_175 = arith.constant 0 : index
    %491 = vector.load %arg1[%c88_174, %c0_175] : memref<136x384xf32, #tpu.memory_space<vmem>>, vector<32x4xf32>
    %cst_176 = arith.constant dense<0.000000e+00> : vector<8x4xf32>
    %492 = tpu.matmul %490, %491, %cst_176 {dimension_numbers = #tpu.dot_dimension_numbers<[1], [0], [0], [1], [0, 0, 1, 1], [], []>} : vector<8x32xf32>, vector<32x4xf32>, vector<8x4xf32> -> vector<8x4xf32>
    %493 = arith.addf %492, %220 : vector<8x4xf32>
    %cst_177 = arith.constant 0.000000e+00 : f32
    %494 = vector.broadcast %cst_177 : f32 to vector<8x4xf32>
    %495 = arith.maximumf %493, %494 : vector<8x4xf32>
    %c56_178 = arith.constant 56 : index
    %c0_179 = arith.constant 0 : index
    %496 = vector.load %arg3[%c56_178, %c0_179] : memref<64x4xf32, #tpu.memory_space<vmem>>, vector<8x4xf32>
    tpu.vector_store %arg3[%c56_178, %c0_179], %495 {strides = array<i32>} : memref<64x4xf32, #tpu.memory_space<vmem>>, vector<8x4xf32>,
    %c0_180 = arith.constant 0 : index
    %c0_181 = arith.constant 0 : index
    %497 = vector.load %arg3[%c0_180, %c0_181] : memref<64x4xf32, #tpu.memory_space<vmem>>, vector<64x4xf32>
    %c120 = arith.constant 120 : index
    %c0_182 = arith.constant 0 : index
    %498 = vector.load %arg1[%c120, %c0_182] : memref<136x384xf32, #tpu.memory_space<vmem>>, vector<4x4xf32>
    %cst_183 = arith.constant dense<0.000000e+00> : vector<64x4xf32>
    %499 = tpu.matmul %497, %498, %cst_183 {dimension_numbers = #tpu.dot_dimension_numbers<[1], [0], [0], [1], [0, 0, 1, 1], [], []>} : vector<64x4xf32>, vector<4x4xf32>, vector<64x4xf32> -> vector<64x4xf32>
    %500 = vector.extract_strided_slice %0 {offsets = [5, 0], sizes = [1, 4], strides = [1, 1]} : vector<8x384xf32> to vector<1x4xf32>
    %501 = vector.shape_cast %500 : vector<1x4xf32> to vector<1x4xf32>
    %502 = vector.broadcast %501 : vector<1x4xf32> to vector<64x4xf32>
    %503 = arith.addf %499, %502 : vector<64x4xf32>
    %c0_184 = arith.constant 0 : index
    %c0_185 = arith.constant 0 : index
    %504 = vector.load %arg2[%c0_184, %c0_185] : memref<64x4xf32, #tpu.memory_space<vmem>>, vector<64x4xf32>
    tpu.vector_store %arg2[%c0_184, %c0_185], %503 {strides = array<i32>} : memref<64x4xf32, #tpu.memory_space<vmem>>, vector<64x4xf32>,
    return
  }
}

</mosaic_0001>

<bundles_post_ra>
// kernel: forward.1
= control target key start
LH: loop header
LB: loop body
LE: loop exit
PB: predicated region body
PF: predicated region fallthrough
CT: control target
= control target key end

     0   :  { %7 = vsyncpa [#allocation4], 0  ;;  %s6110_s9 = smov [#allocation3]   ;;  %s6773_s0 = inlined_call_operand.vmem [shape: f32[64,4], index: 0, kind: input, shape index: {}]   ;;  %s6774_s1 = inlined_call_operand.hbm [shape: f32[136,384], index: 1, kind: input, shape index: {}]   ;;  %s6775_s2 = inlined_call_operand.vmem [shape: f32[64,4], index: 2, kind: output, shape index: {}]  }
   0x1   :  { %s15_s10 = sshll.u32 %s6110_s9, 4  ;;  %s6086_s13 = scalar_lea.hbm %s6774_s1, 6528  ;;  %s16_s10 = int_to_ptr.vmem [resolvable:$true] %s15_s10 }
   0x2   :  { %p6087_p0 = scmp.ne.s32.totalorder %s6774_s1, %s6086_s13  ;;  %p6090_p1 = scmp.lt.u32.totalorder %s6086_s13, %s6774_s1 }
   0x4   :  { %p6092_p2 = pnand %p6090_p1, %p6087_p0 }
   0x6   :  { %6095 = shalt.err (!%p6092_p2)
}
   0x7   :  { %s6096_s18 = scalar_lea.vmem %s16_s10, 6528  ;;  %p6101_p4 = scmp.lt.s32.totalorder %s16_s10, %s16_s10 }
   0x8   :  { %p6097_p3 = scmp.ne.s32.totalorder %s16_s10, %s6096_s18  ;;  %p6102_p5 = scmp.lt.s32.totalorder %s6096_s18, %s6096_s18 }
   0xa   :  { %p6103_p6 = por %p6102_p5, %p6101_p4 }
   0xc   :  { %p6104_p7 = pnand %p6103_p6, %p6097_p3 }
   0xe   :  { %6107 = shalt.err (!%p6104_p7)
}
   0xf   :  { %s6111_s19 = smov 384   ;;  %s6112_s20 = smov 24  }
  0x10   :  { %21 = dma.hbm_to_vmem [thread:$0]  %s6774_s1, 6528, %s16_s10, [#allocation4], %s6111_s19, %s6111_s19, %s6112_s20  }
  0x11   :  { %6108 = dma.done.wait [#allocation4], 6528  }
  0x12   :  { %6109 = vsyncadd [#allocation4], 4294960768  ;;  %v6113_v0 = vmov 0.0   ;;  %vm76_vm0 = vcmask 1043456   ;;  %v37_v1 = vld [vmem:[#allocation3 + $0xc8] sm:$0xf]  ;;  %v39_v31 = vlaneseq }
  0x13   :  { %150 = vmatprep.mubr.f32.mxu0 %v6113_v0  ;;  %v36_v2 = vld [vmem:[#allocation3 + $0xc0] sm:$0xf]  ;;  %vm51_vm1 = vcmask 31744   ;;  %5055 = vmatprep.subr.msk.mxu0 %vm76_vm0, %v37_v1  ;;  %v309_v4 = vld [vmem:[#allocation3 + $0x8] sm:$0xff]  ;;  %v311_v8 = vld [vmem:[#allocation3 + $0x18] sm:$0xff]  ;;  %v6114_v24 = vmov 0.0|0.0  }
  0x14   :  { %v28_v3 = vld [vmem:[%s6773_s0] sm:$0xff]  ;;  %5056 = vmatpush1.msk.msra.mxu0 %vm76_vm0, %v36_v2  ;;  %v29_v10 = vld [vmem:[%s6773_s0 + $0x8] sm:$0xff]  ;;  %v315_v11 = vld [vmem:[#allocation3 + $0x38] sm:$0xff]  ;;  %vm6115_vm2 = vmmov 0   ;;  %v6237_v32 = vshrl.u32 %v39_v31, 7  ;;  %vm320_vm3 = vcmask 261120  }
  0x15   :  { %v312_v5 = vld [vmem:[#allocation3 + $0x20] sm:$0xff]  ;;  %5317 = vmatprep.mubr.msk.f32.mxu1 %vm51_vm1, %v28_v3  ;;  %5057 = vmatmul.mubr.msk.f32.vlgmr.msra.gmra.mrb[0].mxu0 %vm51_vm1, %v28_v3  ;;  %v318_v12 = vld [vmem:[#allocation3 + $0x50] sm:$0xff]  ;;  %v317_v14 = vld [vmem:[#allocation3 + $0x48] sm:$0xff] }
  0x16   :  { %v308_v6 = vld [vmem:[#allocation3] sm:$0xff]  ;;  %v6150_v7 = vpack.c.bf16 %v312_v5, %v309_v4  ;;  %156 = vmatprep.mubr.f32.mxu0 %v6113_v0  ;;  %v314_v13 = vld [vmem:[#allocation3 + $0x30] sm:$0xff]  ;;  %v6161_v15 = vpack.c.bf16 %v318_v12, %v315_v11  ;;  %v313_v19 = vld [vmem:[#allocation3 + $0x28] sm:$0xff]  ;;  %v41_v33 = vsub.s32 0, %v6237_v32  ;;  %v306_v63 = vsub.s32 3, %v6237_v32 }
  0x17   :  { %v6153_v9 = vpack.c.bf16 %v311_v8, %v308_v6  ;;  %v6163_v16 = vpack.c.bf16 %v317_v14, %v314_v13  ;;  %v38_v17 = vld [vmem:[#allocation3 + $0xd0] sm:$0xf]  ;;  %v316_v22 = vld [vmem:[#allocation3 + $0x40] sm:$0xff]  ;;  %v319_v23 = vld [vmem:[#allocation3 + $0x58] sm:$0xff] }
  0x18   :  { %5648 = vmatprep.subr.bf16.mxu0 %v6150_v7  ;;  %v310_v18 = vld [vmem:[#allocation3 + $0x10] sm:$0xff]  ;;  %5315 = vmatprep.subr.msk.mxu1 %vm76_vm0, %v38_v17  ;;  %v31_v25 = vld [vmem:[%s6773_s0 + $0x18] sm:$0xff]  ;;  %v6185_v26 = vpack.c.bf16 %v319_v23, %v316_v22  ;;  %v32_v27 = vld [vmem:[%s6773_s0 + $0x20] sm:$0xff] }
  0x19   :  { %5650 = vmatpush1.bf16.msra.mxu0 %v6153_v9  ;;  %v6167_v20 = vpack.c.bf16 %v313_v19, %v310_v18  ;;  %v30_v21 = vld [vmem:[%s6773_s0 + $0x10] sm:$0xff]  ;;  %5316 = vmatpush3.msk.msra.mxu1 %vm76_vm0, %v38_v17  ;;  %v33_v28 = vld [vmem:[%s6773_s0 + $0x28] sm:$0xff]  ;;  %v6211_v30 = vld [vmem:[%s6773_s0 + $0x38] sm:$0xff] }
  0x1a   :  { %5058 = vmatmul.mubr.msk.f32.gmra.mrb[2].mxu0 %vm51_vm1, %v29_v10  ;;  %5652 = vmatprep.subr.bf16.mxu0 %v6161_v15  ;;  %v34_v29 = vld [vmem:[%s6773_s0 + $0x30] sm:$0xff]  ;;  %v6257_v53 = vld [vmem:[#allocation3 + $0x180] sm:$0xff]  ;;  %v6262_v55 = vld [vmem:[#allocation3 + $0x188] sm:$0xff] }
  0x1b   :  { %162 = vmatprep.mubr.f32.mxu0 %v6113_v0  ;;  %5318 = vmatmul.mubr.msk.f32.vlgmr.msra.gmra.mrb[0].mxu1 %vm51_vm1, %v29_v10  ;;  %v6240_v34 = vld [vmem:[#allocation3 + $0x190] sm:$0xff]  ;;  %v6260_v54 = vrot.slane %v6257_v53, %v41_v33  ;;  %v6265_v57 = vrot.slane %v6262_v55, %v41_v33  ;;  %v6273_v1 = vrot.slane %v6257_v53, %v306_v63 }
  0x1c   :  { %5655 = vmatprep.subr.bf16.mxu1 %v6114_v24  ;;  %5320 = vmatprep.mubr.msk.f32.mxu1 %vm51_vm1, %v30_v21  ;;  %v50_v35 = vrot.slane %v6240_v34, %v41_v33 }
  0x1d   :  { %5654 = vmatpush1.bf16.msra.mxu0 %v6163_v16  ;;  %5657 = vmatpush3.bf16.msra.mxu1 %v6167_v20 }
  0x1e   :  { %5059 = vmatmul.mubr.msk.f32.gmra.mrb[4].mxu0 %vm51_vm1, %v30_v21  ;;  %5658 = vmatprep.subr.bf16.mxu1 %v6114_v24 }
  0x1f   :  { %168 = vmatprep.mubr.f32.mxu0 %v6113_v0  ;;  %5662 = vmatprep.subr.bf16.mxu0 %v6150_v7 }
  0x20   :  { %5321 = vmatmul.mubr.msk.f32.gmra.mrb[2].mxu1 %vm51_vm1, %v31_v25 }
  0x21   :  { %5323 = vmatprep.mubr.msk.f32.mxu1 %vm51_vm1, %v32_v27  ;;  %5660 = vmatpush3.bf16.msra.mxu1 %v6185_v26 }
  0x22   :  { %5060 = vmatmul.mubr.msk.f32.gmra.mrb[6].mxu0 %vm51_vm1, %v31_v25  ;;  %5669 = vmatprep.subr.bf16.mxu1 %v6114_v24 }
  0x23   :  { %174 = vmatprep.mubr.f32.mxu0 %v6113_v0 }
  0x24   :  { %5324 = vmatmul.mubr.msk.f32.gmra.mrb[4].mxu1 %vm51_vm1, %v33_v28 }
  0x25   :  { %5326 = vmatprep.mubr.msk.f32.mxu1 %vm51_vm1, %v34_v29 }
  0x26   :  { %5061 = vmatmul.mubr.msk.f32.gmra.mrb[8].mxu0 %vm51_vm1, %v32_v27 }
  0x27   :  { %180 = vmatprep.mubr.f32.mxu0 %v6113_v0 }
  0x28   :  { %5327 = vmatmul.mubr.msk.f32.gmra.mrb[6].mxu1 %vm51_vm1, %v6211_v30 }
  0x29   :  { %5337 = vmatprep.mubr.msk.f32.mxu1 %vm6115_vm2, %v6113_v0 }
  0x2a   :  { %5062 = vmatmul.mubr.msk.f32.gmra.mrb[10].mxu0 %vm51_vm1, %v33_v28 }
  0x2b   :  { %186 = vmatprep.mubr.f32.mxu0 %v6113_v0 }
  0x2c   :  { %5338 = vmatmul.mubr.f32.vlgmr.msra.gmra.mrb[8].mxu1 %v6113_v0 }
  0x2d   :  { %5671 = vmatpush3.bf16.msra.mxu1 %v6167_v20  ;;  %5348 = vmatprep.mubr.msk.f32.mxu1 %vm6115_vm2, %v6113_v0 }
  0x2e   :  { %5063 = vmatmul.mubr.msk.f32.gmra.mrb[12].mxu0 %vm51_vm1, %v34_v29  ;;  %5672 = vmatprep.subr.bf16.mxu1 %v6114_v24 }
  0x2f   :  { %192 = vmatprep.mubr.f32.mxu0 %v6113_v0 }
  0x31   :  { %5674 = vmatpush3.bf16.msra.mxu1 %v6185_v26 }
  0x32   :  { %5064 = vmatmul.mubr.msk.f32.gmra.mrb[14].mxu0 %vm51_vm1, %v6211_v30  ;;  %5683 = vmatprep.subr.bf16.mxu1 %v6114_v24 }
  0x33   :  { %388 = vmatprep.mubr.f32.mxu0 %v6113_v0 }
  0x36   :  { %389 = vmatmul.mubr.f32.vlgmr.msra.gmra.mrb[0].mxu0 %v6113_v0 }
  0x37   :  { %5664 = vmatpush1.bf16.msra.mxu0 %v6153_v9  ;;  %550 = vmatprep.mubr.f32.mxu0 %v6113_v0 }
  0x38   :  { %5666 = vmatprep.subr.bf16.mxu0 %v6161_v15 }
  0x3b   :  { %5668 = vmatpush1.bf16.msra.mxu0 %v6163_v16 }
  0x3c   :  { %5676 = vmatprep.subr.bf16.mxu0 %v6150_v7 }
  0xee   :  { %v5319_v36 = vpop.f32.mrb[0].mxu1 }
  0xef   :  { %v6243_v37 = vadd.f32 %v5319_v36, %v50_v35  ;;  %v265_v38 = vpop.f32.mrb[1].mxu1 }
  0xf0   :  { %v266_v6 = vadd.f32 %v265_v38, %v50_v35 }
  0xf3   :  { %v5322_v39 = vpop.f32.mrb[2].mxu1 }
  0xf4   :  { %v6245_v40 = vadd.f32 %v5322_v39, %v50_v35  ;;  %v275_v41 = vpop.f32.mrb[3].mxu1 }
  0xf5   :  { %v6247_v42 = vadd.f32 %v275_v41, %v50_v35 }
  0xf7   :  { %v5325_v43 = vpop.f32.mrb[4].mxu1 }
  0xf8   :  { %v6249_v44 = vadd.f32 %v5325_v43, %v50_v35  ;;  %v285_v45 = vpop.f32.mrb[5].mxu1 }
  0xf9   :  { %v6251_v46 = vadd.f32 %v285_v45, %v50_v35 }
  0xfb   :  { %v5328_v47 = vpop.f32.mrb[6].mxu1 }
  0xfc   :  { %v6253_v48 = vadd.f32 %v5328_v47, %v50_v35  ;;  %v295_v49 = vpop.f32.mrb[7].mxu1 }
  0xfd   :  { %v6255_v50 = vadd.f32 %v295_v49, %v50_v35 }
  0xff   :  { %v461_v51 = vpop.f32.mrb[8].mxu1 }
 0x100   :  { %v5339_v52 = vpop.f32.mrb[9].mxu1  ;;  %v475_v4 = vadd.f32 %v461_v51, %v6273_v1 }
 0x109   :  { %v390_v56 = vpop.f32.mrb[0].mxu0 }
 0x10a   :  { %v5919_v58 = vadd.f32 %v390_v56, %v6260_v54  ;;  %v392_v59 = vpop.f32.mrb[1].mxu0 }
 0x10b   :  { %v5920_v61 = vadd.f32 %v392_v59, %v6265_v57 }
 0x10c   :  { %v467_v60 = vmul.f32 0.5, %v5919_v58 }
 0x10d   :  { %v468_v62 = vmul.f32 0.5, %v5920_v61 }
 0x10e   :  { %5989 = vtanh.f32 %v467_v60 }
 0x10f   :  { %5991 = vtanh.f32 %v468_v62 }
 0x118   :  { %v5990_v2 = vpop.eup %5989 }
 0x119   :  { %v471_v3 = vadd.f32 1.0, %v5990_v2  ;;  %v5992_v10 = vpop.eup %5991 }
 0x11a   :  { %v472_v12 = vadd.f32 1.0, %v5992_v10 }
 0x11b   :  { %v473_v5 = vmul.f32 0.5, %v471_v3 }
 0x11c   :  { %v474_v13 = vmul.f32 0.5, %v472_v12 }
 0x11d   :  { %v476_v8 = vmul.f32 %v475_v4, %v473_v5 }
 0x11e   :  { %v479_v14 = vsub.f32 1.0, %v474_v13  ;;  %v481_v18 = vmul.f32 0.0, %v474_v13 }
 0x11f   :  { %v477_v11 = vadd.f32 %v476_v8, %v266_v6 }
 0x121   :  { %5993 = vtanh.f32 %v477_v11 }
 0x12b   :  { %v5994_v17 = vpop.eup %5993 }
 0x12c   :  { %v480_v19 = vmul.f32 %v5994_v17, %v479_v14 }
 0x12e   :  { %v482_v21 = vadd.f32 %v481_v18, %v480_v19 }
 0x130   :  { %5074 = vmatmul.mubr.msk.f32.vlgmr.msra.gmra.mrb[2].mxu0 %vm320_vm3, %v482_v21  ;;  %5349 = vmatmul.mubr.msk.f32.vlgmr.msra.gmra.mrb[10].mxu1 %vm320_vm3, %v482_v21 }
 0x131   :  { %5678 = vmatpush1.bf16.msra.mxu0 %v6153_v9  ;;  %5685 = vmatpush3.bf16.msra.mxu1 %v6167_v20 }
 0x132   :  { %5680 = vmatprep.subr.bf16.mxu0 %v6161_v15  ;;  %5686 = vmatprep.subr.bf16.mxu1 %v6114_v24 }
 0x133   :  { %712 = vmatprep.mubr.f32.mxu0 %v6113_v0  ;;  %5359 = vmatprep.mubr.msk.f32.mxu1 %vm6115_vm2, %v6113_v0 }
 0x135   :  { %5682 = vmatpush1.bf16.msra.mxu0 %v6163_v16  ;;  %5688 = vmatpush3.bf16.msra.mxu1 %v6185_v26 }
 0x136   :  { %5690 = vmatprep.subr.bf16.mxu0 %v6150_v7  ;;  %5697 = vmatprep.subr.bf16.mxu1 %v6114_v24 }
 0x203   :  { %v552_v22 = vpop.f32.mrb[2].mxu0  ;;  %v623_v23 = vpop.f32.mrb[10].mxu1 }
 0x204   :  { %v5921_v25 = vadd.f32 %v552_v22, %v6260_v54  ;;  %v554_v27 = vpop.f32.mrb[3].mxu0  ;;  %v5350_v28 = vpop.f32.mrb[11].mxu1  ;;  %v637_v39 = vadd.f32 %v623_v23, %v6273_v1 }
 0x205   :  { %v5922_v31 = vadd.f32 %v554_v27, %v6265_v57 }
 0x206   :  { %v629_v29 = vmul.f32 0.5, %v5921_v25 }
 0x207   :  { %v630_v33 = vmul.f32 0.5, %v5922_v31 }
 0x208   :  { %5995 = vtanh.f32 %v629_v29 }
 0x209   :  { %5997 = vtanh.f32 %v630_v33 }
 0x212   :  { %v5996_v35 = vpop.eup %5995 }
 0x213   :  { %v633_v36 = vadd.f32 1.0, %v5996_v35  ;;  %v5998_v43 = vpop.eup %5997 }
 0x214   :  { %v634_v47 = vadd.f32 1.0, %v5998_v43 }
 0x215   :  { %v635_v38 = vmul.f32 0.5, %v633_v36 }
 0x216   :  { %v636_v49 = vmul.f32 0.5, %v634_v47 }
 0x217   :  { %v638_v41 = vmul.f32 %v637_v39, %v635_v38 }
 0x218   :  { %v641_v51 = vsub.f32 1.0, %v636_v49  ;;  %v643_v58 = vmul.f32 %v636_v49, %v482_v21 }
 0x219   :  { %v639_v45 = vadd.f32 %v638_v41, %v6243_v37 }
 0x21b   :  { %5999 = vtanh.f32 %v639_v45 }
 0x225   :  { %v6000_v52 = vpop.eup %5999 }
 0x226   :  { %v642_v56 = vmul.f32 %v6000_v52, %v641_v51 }
 0x228   :  { %v644_v59 = vadd.f32 %v643_v58, %v642_v56 }
 0x22a   :  { %5076 = vmatmul.mubr.msk.f32.vlgmr.msra.gmra.mrb[4].mxu0 %vm320_vm3, %v644_v59  ;;  %5360 = vmatmul.mubr.msk.f32.vlgmr.msra.gmra.mrb[12].mxu1 %vm320_vm3, %v644_v59 }
 0x22b   :  { %5692 = vmatpush1.bf16.msra.mxu0 %v6153_v9  ;;  %5699 = vmatpush3.bf16.msra.mxu1 %v6167_v20 }
 0x22c   :  { %5694 = vmatprep.subr.bf16.mxu0 %v6161_v15  ;;  %5700 = vmatprep.subr.bf16.mxu1 %v6114_v24 }
 0x22d   :  { %874 = vmatprep.mubr.f32.mxu0 %v6113_v0  ;;  %5370 = vmatprep.mubr.msk.f32.mxu1 %vm6115_vm2, %v6113_v0 }
 0x22f   :  { %5696 = vmatpush1.bf16.msra.mxu0 %v6163_v16  ;;  %5702 = vmatpush3.bf16.msra.mxu1 %v6185_v26 }
 0x230   :  { %5704 = vmatprep.subr.bf16.mxu0 %v6150_v7  ;;  %5711 = vmatprep.subr.bf16.mxu1 %v6114_v24 }
 0x2fd   :  { %v714_v37 = vpop.f32.mrb[4].mxu0  ;;  %v785_v60 = vpop.f32.mrb[12].mxu1 }
 0x2fe   :  { %v5923_v61 = vadd.f32 %v714_v37, %v6260_v54  ;;  %v716_v62 = vpop.f32.mrb[5].mxu0  ;;  %v5361_v2 = vpop.f32.mrb[13].mxu1  ;;  %v799_v11 = vadd.f32 %v785_v60, %v6273_v1 }
 0x2ff   :  { %v5924_v4 = vadd.f32 %v716_v62, %v6265_v57 }
 0x300   :  { %v791_v3 = vmul.f32 0.5, %v5923_v61 }
 0x301   :  { %v792_v5 = vmul.f32 0.5, %v5924_v4 }
 0x302   :  { %6001 = vtanh.f32 %v791_v3 }
 0x303   :  { %6003 = vtanh.f32 %v792_v5 }
 0x30c   :  { %v6002_v6 = vpop.eup %6001 }
 0x30d   :  { %v795_v8 = vadd.f32 1.0, %v6002_v6  ;;  %v6004_v13 = vpop.eup %6003 }
 0x30e   :  { %v796_v17 = vadd.f32 1.0, %v6004_v13 }
 0x30f   :  { %v797_v10 = vmul.f32 0.5, %v795_v8 }
 0x310   :  { %v798_v18 = vmul.f32 0.5, %v796_v17 }
 0x311   :  { %v800_v12 = vmul.f32 %v799_v11, %v797_v10 }
 0x312   :  { %v803_v19 = vsub.f32 1.0, %v798_v18  ;;  %v805_v23 = vmul.f32 %v798_v18, %v644_v59 }
 0x313   :  { %v801_v14 = vadd.f32 %v800_v12, %v6247_v42 }
 0x315   :  { %6005 = vtanh.f32 %v801_v14 }
 0x31f   :  { %v6006_v21 = vpop.eup %6005 }
 0x320   :  { %v804_v22 = vmul.f32 %v6006_v21, %v803_v19 }
 0x322   :  { %v806_v25 = vadd.f32 %v805_v23, %v804_v22 }
 0x324   :  { %5078 = vmatmul.mubr.msk.f32.vlgmr.msra.gmra.mrb[6].mxu0 %vm320_vm3, %v806_v25  ;;  %5371 = vmatmul.mubr.msk.f32.vlgmr.msra.gmra.mrb[14].mxu1 %vm320_vm3, %v806_v25 }
 0x325   :  { %5706 = vmatpush1.bf16.msra.mxu0 %v6153_v9  ;;  %5713 = vmatpush3.bf16.msra.mxu1 %v6167_v20 }
 0x326   :  { %5708 = vmatprep.subr.bf16.mxu0 %v6161_v15  ;;  %5714 = vmatprep.subr.bf16.mxu1 %v6114_v24 }
 0x327   :  { %1036 = vmatprep.mubr.f32.mxu0 %v6113_v0  ;;  %5381 = vmatprep.mubr.msk.f32.mxu1 %vm6115_vm2, %v6113_v0 }
 0x329   :  { %5710 = vmatpush1.bf16.msra.mxu0 %v6163_v16  ;;  %5716 = vmatpush3.bf16.msra.mxu1 %v6185_v26 }
 0x32a   :  { %5718 = vmatprep.subr.bf16.mxu0 %v6150_v7  ;;  %5725 = vmatprep.subr.bf16.mxu1 %v6114_v24 }
 0x3f7   :  { %v876_v42 = vpop.f32.mrb[6].mxu0  ;;  %v947_v27 = vpop.f32.mrb[14].mxu1 }
 0x3f8   :  { %v5925_v28 = vadd.f32 %v876_v42, %v6260_v54  ;;  %v878_v29 = vpop.f32.mrb[7].mxu0  ;;  %v5372_v31 = vpop.f32.mrb[15].mxu1  ;;  %v961_v43 = vadd.f32 %v947_v27, %v6273_v1 }
 0x3f9   :  { %v5926_v35 = vadd.f32 %v878_v29, %v6265_v57 }
 0x3fa   :  { %v953_v33 = vmul.f32 0.5, %v5925_v28 }
 0x3fb   :  { %v954_v36 = vmul.f32 0.5, %v5926_v35 }
 0x3fc   :  { %6007 = vtanh.f32 %v953_v33 }
 0x3fd   :  { %6009 = vtanh.f32 %v954_v36 }
 0x406   :  { %v6008_v38 = vpop.eup %6007 }
 0x407   :  { %v957_v39 = vadd.f32 1.0, %v6008_v38  ;;  %v6010_v47 = vpop.eup %6009 }
 0x408   :  { %v958_v51 = vadd.f32 1.0, %v6010_v47 }
 0x409   :  { %v959_v41 = vmul.f32 0.5, %v957_v39 }
 0x40a   :  { %v960_v52 = vmul.f32 0.5, %v958_v51 }
 0x40b   :  { %v962_v45 = vmul.f32 %v961_v43, %v959_v41 }
 0x40c   :  { %v965_v56 = vsub.f32 1.0, %v960_v52  ;;  %v967_v37 = vmul.f32 %v960_v52, %v806_v25 }
 0x40d   :  { %v963_v49 = vadd.f32 %v962_v45, %v6245_v40 }
 0x40f   :  { %6011 = vtanh.f32 %v963_v49 }
 0x419   :  { %v6012_v58 = vpop.eup %6011 }
 0x41a   :  { %v966_v59 = vmul.f32 %v6012_v58, %v965_v56 }
 0x41c   :  { %v968_v60 = vadd.f32 %v967_v37, %v966_v59 }
 0x41e   :  { %5080 = vmatmul.mubr.msk.f32.vlgmr.msra.gmra.mrb[8].mxu0 %vm320_vm3, %v968_v60  ;;  %5382 = vmatmul.mubr.msk.f32.vlgmr.msra.gmra.mrb[16].mxu1 %vm320_vm3, %v968_v60 }
 0x41f   :  { %5720 = vmatpush1.bf16.msra.mxu0 %v6153_v9  ;;  %5727 = vmatpush3.bf16.msra.mxu1 %v6167_v20 }
 0x420   :  { %5722 = vmatprep.subr.bf16.mxu0 %v6161_v15  ;;  %5728 = vmatprep.subr.bf16.mxu1 %v6114_v24 }
 0x421   :  { %1198 = vmatprep.mubr.f32.mxu0 %v6113_v0  ;;  %5392 = vmatprep.mubr.msk.f32.mxu1 %vm6115_vm2, %v6113_v0 }
 0x423   :  { %5724 = vmatpush1.bf16.msra.mxu0 %v6163_v16  ;;  %5730 = vmatpush3.bf16.msra.mxu1 %v6185_v26 }
 0x424   :  { %5732 = vmatprep.subr.bf16.mxu0 %v6150_v7  ;;  %5739 = vmatprep.subr.bf16.mxu1 %v6114_v24 }
 0x4f1   :  { %v1038_v40 = vpop.f32.mrb[8].mxu0  ;;  %v1109_v61 = vpop.f32.mrb[16].mxu1 }
 0x4f2   :  { %v5927_v62 = vadd.f32 %v1038_v40, %v6260_v54  ;;  %v1040_v2 = vpop.f32.mrb[9].mxu0  ;;  %v5383_v3 = vpop.f32.mrb[17].mxu1  ;;  %v1123_v12 = vadd.f32 %v1109_v61, %v6273_v1 }
 0x4f3   :  { %v5928_v5 = vadd.f32 %v1040_v2, %v6265_v57 }
 0x4f4   :  { %v1115_v4 = vmul.f32 0.5, %v5927_v62 }
 0x4f5   :  { %v1116_v6 = vmul.f32 0.5, %v5928_v5 }
 0x4f6   :  { %6013 = vtanh.f32 %v1115_v4 }
 0x4f7   :  { %6015 = vtanh.f32 %v1116_v6 }
 0x500   :  { %v6014_v8 = vpop.eup %6013 }
 0x501   :  { %v1119_v10 = vadd.f32 1.0, %v6014_v8  ;;  %v6016_v14 = vpop.eup %6015 }
 0x502   :  { %v1120_v18 = vadd.f32 1.0, %v6016_v14 }
 0x503   :  { %v1121_v11 = vmul.f32 0.5, %v1119_v10 }
 0x504   :  { %v1122_v19 = vmul.f32 0.5, %v1120_v18  ;;  %v1803_v18 = vld [vmem:[#allocation3 + $0x68] sm:$0xff] }
 0x505   :  { %v1124_v13 = vmul.f32 %v1123_v12, %v1121_v11 }
 0x506   :  { %v1127_v21 = vsub.f32 1.0, %v1122_v19  ;;  %v1129_v25 = vmul.f32 %v1122_v19, %v968_v60  ;;  %v1806_v19 = vld [vmem:[#allocation3 + $0x80] sm:$0xff] }
 0x507   :  { %v1125_v17 = vadd.f32 %v1124_v13, %v6251_v46 }
 0x509   :  { %6017 = vtanh.f32 %v1125_v17 }
 0x513   :  { %v6018_v22 = vpop.eup %6017 }
 0x514   :  { %v1128_v23 = vmul.f32 %v6018_v22, %v1127_v21  ;;  %v1639_v21 = vld [vmem:[#allocation3 + $0xe8] sm:$0xf]  ;;  %v1637_v22 = vld [vmem:[#allocation3 + $0xd8] sm:$0xf] }
 0x516   :  { %v1130_v42 = vadd.f32 %v1129_v25, %v1128_v23  ;;  %v6387_v23 = vpack.c.bf16 %v1806_v19, %v1803_v18  ;;  %v1802_v25 = vld [vmem:[#allocation3 + $0x60] sm:$0xff] }
 0x518   :  { %5082 = vmatmul.mubr.msk.f32.vlgmr.msra.gmra.mrb[10].mxu0 %vm320_vm3, %v1130_v42  ;;  %5393 = vmatmul.mubr.msk.f32.vlgmr.msra.gmra.mrb[18].mxu1 %vm320_vm3, %v1130_v42 }
 0x519   :  { %5734 = vmatpush1.bf16.msra.mxu0 %v6153_v9  ;;  %5741 = vmatpush3.bf16.msra.mxu1 %v6167_v20 }
 0x51a   :  { %5736 = vmatprep.subr.bf16.mxu0 %v6161_v15  ;;  %5742 = vmatprep.subr.bf16.mxu1 %v6114_v24 }
 0x51b   :  { %1360 = vmatprep.mubr.f32.mxu0 %v6113_v0  ;;  %5403 = vmatprep.mubr.msk.f32.mxu1 %vm6115_vm2, %v6113_v0 }
 0x51d   :  { %5738 = vmatpush1.bf16.msra.mxu0 %v6163_v16  ;;  %5744 = vmatpush3.bf16.msra.mxu1 %v6185_v26 }
 0x51e   :  { %5746 = vmatprep.subr.bf16.mxu0 %v6150_v7  ;;  %5753 = vmatprep.subr.bf16.mxu1 %v6114_v24 }
 0x5eb   :  { %v1200_v46 = vpop.f32.mrb[10].mxu0  ;;  %v1271_v27 = vpop.f32.mrb[18].mxu1 }
 0x5ec   :  { %v5929_v28 = vadd.f32 %v1200_v46, %v6260_v54  ;;  %v1202_v29 = vpop.f32.mrb[11].mxu0  ;;  %v5394_v31 = vpop.f32.mrb[19].mxu1  ;;  %v1285_v43 = vadd.f32 %v1271_v27, %v6273_v1  ;;  %v1804_v46 = vld [vmem:[#allocation3 + $0x70] sm:$0xff]  ;;  %v1807_v27 = vld [vmem:[#allocation3 + $0x88] sm:$0xff] }
 0x5ed   :  { %v5930_v35 = vadd.f32 %v1202_v29, %v6265_v57  ;;  %v6395_v29 = vpack.c.bf16 %v1807_v27, %v1804_v46  ;;  %v1809_v31 = vld [vmem:[#allocation3 + $0x98] sm:$0xff] }
 0x5ee   :  { %v1277_v33 = vmul.f32 0.5, %v5929_v28 }
 0x5ef   :  { %v1278_v36 = vmul.f32 0.5, %v5930_v35 }
 0x5f0   :  { %6019 = vtanh.f32 %v1277_v33  ;;  %v1812_v33 = vld [vmem:[#allocation3 + $0xb0] sm:$0xff] }
 0x5f1   :  { %6021 = vtanh.f32 %v1278_v36  ;;  %v6403_v35 = vpack.c.bf16 %v1812_v33, %v1809_v31  ;;  %v1808_v36 = vld [vmem:[#allocation3 + $0x90] sm:$0xff]  ;;  %v6441_v31 = vrot.slane %v6262_v55, %v306_v63 }
 0x5fa   :  { %v6020_v38 = vpop.eup %6019 }
 0x5fb   :  { %v1281_v39 = vadd.f32 1.0, %v6020_v38  ;;  %v6022_v45 = vpop.eup %6021  ;;  %v1811_v38 = vld [vmem:[#allocation3 + $0xa8] sm:$0xff] }
 0x5fc   :  { %v1282_v49 = vadd.f32 1.0, %v6022_v45 }
 0x5fd   :  { %v1283_v41 = vmul.f32 0.5, %v1281_v39  ;;  %v1810_v39 = vld [vmem:[#allocation3 + $0xa0] sm:$0xff] }
 0x5fe   :  { %v1284_v51 = vmul.f32 0.5, %v1282_v49 }
 0x5ff   :  { %v1286_v7 = vmul.f32 %v1285_v43, %v1283_v41  ;;  %v6406_v41 = vpack.c.bf16 %v1811_v38, %v1808_v36  ;;  %v1813_v43 = vld [vmem:[#allocation3 + $0xb8] sm:$0xff] }
 0x600   :  { %v1289_v52 = vsub.f32 1.0, %v1284_v51  ;;  %v1291_v59 = vmul.f32 %v1284_v51, %v1130_v42  ;;  %v1805_v42 = vld [vmem:[#allocation3 + $0x78] sm:$0xff] }
 0x601   :  { %v1287_v47 = vadd.f32 %v1286_v7, %v6249_v44  ;;  %v6393_v28 = vpack.c.bf16 %v1805_v42, %v1802_v25 }
 0x603   :  { %6023 = vtanh.f32 %v1287_v47 }
 0x60d   :  { %v6024_v56 = vpop.eup %6023 }
 0x60e   :  { %v1290_v58 = vmul.f32 %v6024_v56, %v1289_v52 }
 0x610   :  { %v1292_v37 = vadd.f32 %v1291_v59, %v1290_v58 }
 0x612   :  { %5084 = vmatmul.mubr.msk.f32.vlgmr.msra.gmra.mrb[12].mxu0 %vm320_vm3, %v1292_v37  ;;  %5404 = vmatmul.mubr.msk.f32.vlgmr.msra.gmra.mrb[20].mxu1 %vm320_vm3, %v1292_v37 }
 0x613   :  { %5748 = vmatpush1.bf16.msra.mxu0 %v6153_v9  ;;  %5755 = vmatpush3.bf16.msra.mxu1 %v6167_v20 }
 0x614   :  { %5750 = vmatprep.subr.bf16.mxu0 %v6161_v15  ;;  %5756 = vmatprep.subr.bf16.mxu1 %v6114_v24 }
 0x615   :  { %1522 = vmatprep.mubr.f32.mxu0 %v6113_v0  ;;  %5414 = vmatprep.mubr.msk.f32.mxu1 %vm6115_vm2, %v6113_v0 }
 0x617   :  { %5752 = vmatpush1.bf16.msra.mxu0 %v6163_v16  ;;  %5758 = vmatpush3.bf16.msra.mxu1 %v6185_v26 }
 0x618   :  { %5417 = vmatprep.subr.mxu1 %v6113_v0 }
 0x6e5   :  { %v1362_v44 = vpop.f32.mrb[12].mxu0  ;;  %v1433_v60 = vpop.f32.mrb[20].mxu1 }
 0x6e6   :  { %v5931_v9 = vadd.f32 %v1362_v44, %v6260_v54  ;;  %v1364_v20 = vpop.f32.mrb[13].mxu0  ;;  %v5405_v40 = vpop.f32.mrb[21].mxu1  ;;  %v1447_v16 = vadd.f32 %v1433_v60, %v6273_v1 }
 0x6e7   :  { %v5932_v61 = vadd.f32 %v1364_v20, %v6265_v57 }
 0x6e8   :  { %v1439_v15 = vmul.f32 0.5, %v5931_v9 }
 0x6e9   :  { %v1440_v62 = vmul.f32 0.5, %v5932_v61 }
 0x6ea   :  { %6025 = vtanh.f32 %v1439_v15 }
 0x6eb   :  { %6027 = vtanh.f32 %v1440_v62 }
 0x6f4   :  { %v6026_v2 = vpop.eup %6025 }
 0x6f5   :  { %v1443_v3 = vadd.f32 1.0, %v6026_v2  ;;  %v6028_v5 = vpop.eup %6027 }
 0x6f6   :  { %v1444_v8 = vadd.f32 1.0, %v6028_v5  ;;  %v1977_v5 = vld [vmem:[#allocation3 + $0x120] sm:$0xff] }
 0x6f7   :  { %v1445_v4 = vmul.f32 0.5, %v1443_v3 }
 0x6f8   :  { %v1446_v10 = vmul.f32 0.5, %v1444_v8  ;;  %v1978_v8 = vld [vmem:[#allocation3 + $0x138] sm:$0xff] }
 0x6f9   :  { %v1448_v26 = vmul.f32 %v1447_v16, %v1445_v4 }
 0x6fa   :  { %v1451_v11 = vsub.f32 1.0, %v1446_v10  ;;  %v1453_v14 = vmul.f32 %v1446_v10, %v1292_v37  ;;  %v1979_v10 = vld [vmem:[#allocation3 + $0x150] sm:$0xff] }
 0x6fb   :  { %v1449_v6 = vadd.f32 %v1448_v26, %v6255_v50  ;;  %v1638_v50 = vld [vmem:[#allocation3 + $0xe0] sm:$0xf]  ;;  %v1976_v26 = vld [vmem:[#allocation3 + $0x108] sm:$0xff] }
 0x6fc   :  { %5088 = vmatprep.subr.msk.mxu0 %vm76_vm0, %v1638_v50 }
 0x6fd   :  { %6029 = vtanh.f32 %v1449_v6  ;;  %v6427_v6 = vpack.c.bf16 %v1977_v5, %v1976_v26 }
 0x707   :  { %v6030_v12 = vpop.eup %6029 }
 0x708   :  { %v1452_v13 = vmul.f32 %v6030_v12, %v1451_v11  ;;  %v6431_v11 = vpack.c.bf16 %v1979_v10, %v1978_v8  ;;  %v1642_v12 = vsub.s32 1, %v6237_v32 }
 0x70a   :  { %v6377_v17 = vadd.f32 %v1453_v14, %v1452_v13  ;;  %v1643_v13 = vrot.slane %v6257_v53, %v1642_v12  ;;  %v1647_v14 = vrot.slane %v6262_v55, %v1642_v12  ;;  %v1651_v36 = vrot.slane %v6240_v34, %v1642_v12 }
 0x70c   :  { %5086 = vmatmul.mubr.msk.f32.vlgmr.msra.gmra.mrb[14].mxu0 %vm320_vm3, %v6377_v17  ;;  %5415 = vmatmul.mubr.msk.f32.vlgmr.msra.gmra.mrb[22].mxu1 %vm320_vm3, %v6377_v17 }
 0x70d   :  { %1725 = vmatprep.mubr.f32.mxu0 %v6113_v0  ;;  %5419 = vmatprep.mubr.msk.f32.mxu1 %vm6115_vm2, %v6113_v0 }
 0x70e   :  { %5418 = vmatpush3.msk.msra.mxu1 %vm76_vm0, %v1639_v21  ;;  %5089 = vmatpush1.msk.msra.mxu0 %vm76_vm0, %v1637_v22 }
 0x70f   :  { %5760 = vmatprep.subr.bf16.mxu1 %v6387_v23  ;;  %5767 = vmatprep.subr.bf16.mxu0 %v6114_v24 }
 0x710   :  { %5090 = vmatmul.mubr.msk.f32.vlgmr.msra.gmra.mrb[16].mxu0 %vm51_vm1, %v6211_v30  ;;  %5420 = vmatmul.mubr.msk.f32.vlgmr.msra.gmra.mrb[24].mxu1 %vm51_vm1, %v6211_v30  ;;  %v6410_v30 = vpack.c.bf16 %v1813_v43, %v1810_v39 }
 0x711   :  { %5762 = vmatpush1.bf16.msra.mxu1 %v6393_v28  ;;  %5769 = vmatpush3.bf16.msra.mxu0 %v6395_v29 }
 0x712   :  { %5770 = vmatprep.subr.bf16.mxu0 %v6114_v24  ;;  %1881 = vmatprep.mubr.f32.mxu1 %v6113_v0 }
 0x713   :  { %5764 = vmatprep.subr.bf16.mxu1 %v6403_v35  ;;  %5430 = vmatprep.mubr.msk.f32.mxu0 %vm6115_vm2, %v6113_v0 }
 0x715   :  { %5766 = vmatpush1.bf16.msra.mxu1 %v6406_v41  ;;  %5772 = vmatpush3.bf16.msra.mxu0 %v6410_v30 }
 0x716   :  { %5773 = vmatprep.subr.bf16.mxu1 %v6114_v24 }
 0x7df   :  { %v1524_v7 = vpop.f32.mrb[14].mxu0  ;;  %v1595_v45 = vpop.f32.mrb[22].mxu1 }
 0x7e0   :  { %v5933_v47 = vadd.f32 %v1524_v7, %v6260_v54  ;;  %v1526_v49 = vpop.f32.mrb[15].mxu0  ;;  %v5416_v51 = vpop.f32.mrb[23].mxu1  ;;  %v1609_v60 = vadd.f32 %v1595_v45, %v6273_v1 }
 0x7e1   :  { %v5934_v56 = vadd.f32 %v1526_v49, %v6265_v57 }
 0x7e2   :  { %v1601_v52 = vmul.f32 0.5, %v5933_v47 }
 0x7e3   :  { %v1602_v58 = vmul.f32 0.5, %v5934_v56  ;;  %v1798_v1 = vpop.f32.mrb[24].mxu1 }
 0x7e4   :  { %6031 = vtanh.f32 %v1601_v52  ;;  %v5421_v4 = vpop.f32.mrb[25].mxu1  ;;  %v1799_v7 = vadd.f32 %v1798_v1, %v1651_v36 }
 0x7e5   :  { %6033 = vtanh.f32 %v1602_v58 }
 0x7ee   :  { %v6032_v59 = vpop.eup %6031 }
 0x7ef   :  { %v1605_v37 = vadd.f32 1.0, %v6032_v59  ;;  %v6034_v20 = vpop.eup %6033 }
 0x7f0   :  { %v1606_v15 = vadd.f32 1.0, %v6034_v20  ;;  %v1635_v20 = vsub.s32 4, %v6237_v32 }
 0x7f1   :  { %v1607_v44 = vmul.f32 0.5, %v1605_v37 }
 0x7f2   :  { %v1608_v54 = vmul.f32 0.5, %v1606_v15 }
 0x7f3   :  { %v1610_v9 = vmul.f32 %v1609_v60, %v1607_v44  ;;  %v2056_v44 = vld [vmem:[#allocation3 + $0xf8] sm:$0xf]  ;;  %v2057_v60 = vld [vmem:[#allocation3 + $0x100] sm:$0xf] }
 0x7f4   :  { %v1613_v61 = vsub.f32 1.0, %v1608_v54  ;;  %v1615_v57 = vmul.f32 %v1608_v54, %v6377_v17  ;;  %5096 = vmatprep.subr.msk.mxu0 %vm76_vm0, %v2056_v44 }
 0x7f5   :  { %v1611_v40 = vadd.f32 %v1610_v9, %v6253_v48  ;;  %v1727_v48 = vpop.f32.mrb[16].mxu0  ;;  %v2055_v9 = vld [vmem:[#allocation3 + $0xf0] sm:$0xf] }
 0x7f6   :  { %v1729_v16 = vpop.f32.mrb[17].mxu0  ;;  %v1728_v17 = vadd.f32 %v1727_v48, %v1643_v13 }
 0x7f7   :  { %6035 = vtanh.f32 %v1611_v40  ;;  %v1730_v50 = vadd.f32 %v1729_v16, %v1647_v14  ;;  %v6458_v40 = vrot.slane %v6257_v53, %v1635_v20 }
 0x801   :  { %v6036_v62 = vpop.eup %6035 }
 0x802   :  { %v1614_v2 = vmul.f32 %v6036_v62, %v1613_v61 }
 0x804   :  { %v1616_v3 = vadd.f32 %v1615_v57, %v1614_v2 }
 0x806   :  { %5093 = vmatmul.mubr.msk.f32.vlgmr.msra.gmra.mrb[26].mxu1 %vm320_vm3, %v1616_v3  ;;  %5431 = vmatmul.mubr.msk.f32.vlgmr.msra.gmra.mrb[18].mxu0 %vm320_vm3, %v1616_v3 }
 0x807   :  { %5441 = vmatprep.mubr.msk.f32.mxu1 %vm6115_vm2, %v6113_v0  ;;  %2134 = vmatprep.mubr.f32.mxu0 %v6113_v0 }
 0x808   :  { %5775 = vmatpush3.bf16.msra.mxu1 %v6427_v6  ;;  %5097 = vmatpush1.msk.msra.mxu0 %vm76_vm0, %v2055_v9 }
 0x809   :  { %5776 = vmatprep.subr.bf16.mxu1 %v6114_v24  ;;  %5780 = vmatprep.subr.bf16.mxu0 %v6387_v23 }
 0x80c   :  { %5778 = vmatpush3.bf16.msra.mxu1 %v6431_v11 }
 0x80d   :  { %5444 = vmatprep.subr.mxu1 %v6113_v0 }
 0x8d9   :  { %v1883_v18 = vpop.f32.mrb[26].mxu1  ;;  %v1954_v19 = vpop.f32.mrb[18].mxu0 }
 0x8da   :  { %v1958_v21 = vadd.f32 %v1883_v18, %v1728_v17  ;;  %v1885_v22 = vpop.f32.mrb[27].mxu1  ;;  %v5432_v25 = vpop.f32.mrb[19].mxu0  ;;  %v1968_v43 = vadd.f32 %v1954_v19, %v6441_v31 }
 0x8db   :  { %v1959_v42 = vadd.f32 %v1885_v22, %v1730_v50 }
 0x8dc   :  { %v1960_v46 = vmul.f32 0.5, %v1958_v21 }
 0x8dd   :  { %v1961_v27 = vmul.f32 0.5, %v1959_v42 }
 0x8de   :  { %6037 = vtanh.f32 %v1960_v46 }
 0x8df   :  { %6039 = vtanh.f32 %v1961_v27 }
 0x8e8   :  { %v6038_v33 = vpop.eup %6037 }
 0x8e9   :  { %v1964_v38 = vadd.f32 1.0, %v6038_v33  ;;  %v6040_v47 = vpop.eup %6039 }
 0x8ea   :  { %v1965_v51 = vadd.f32 1.0, %v6040_v47 }
 0x8eb   :  { %v1966_v39 = vmul.f32 0.5, %v1964_v38 }
 0x8ec   :  { %v1967_v52 = vmul.f32 0.5, %v1965_v51 }
 0x8ed   :  { %v1969_v45 = vmul.f32 %v1968_v43, %v1966_v39  ;;  %v2461_v39 = vld [vmem:[#allocation3 + $0xf0] sm:$0xf] }
 0x8ee   :  { %v1972_v56 = vsub.f32 1.0, %v1967_v52  ;;  %v1974_v37 = vmul.f32 %v1967_v52, %v1616_v3  ;;  %v1623_v3 = vsub.s32 2, %v6237_v32 }
 0x8ef   :  { %v1970_v49 = vadd.f32 %v1969_v45, %v1799_v7 }
 0x8f0   :  { %v6487_v1 = vrot.slane %v6257_v53, %v1623_v3  ;;  %v6490_v16 = vrot.slane %v6262_v55, %v1623_v3  ;;  %v6495_v17 = vrot.slane %v6240_v34, %v1623_v3  ;;  %v2462_v34 = vld [vmem:[#allocation3 + $0xf8] sm:$0xf] }
 0x8f1   :  { %6041 = vtanh.f32 %v1970_v49  ;;  %v2463_v49 = vld [vmem:[#allocation3 + $0x100] sm:$0xf] }
 0x8fb   :  { %v6042_v58 = vpop.eup %6041 }
 0x8fc   :  { %v1973_v59 = vmul.f32 %v6042_v58, %v1972_v56 }
 0x8fe   :  { %v6445_v63 = vadd.f32 %v1974_v37, %v1973_v59 }
 0x900   :  { %5442 = vmatmul.mubr.msk.f32.vlgmr.msra.gmra.mrb[28].mxu1 %vm320_vm3, %v6445_v63 }
 0x901   :  { %5446 = vmatprep.mubr.msk.f32.mxu1 %vm6115_vm2, %v6113_v0  ;;  %5445 = vmatpush3.msk.msra.mxu1 %vm76_vm0, %v2057_v60 }
 0x902   :  { %5787 = vmatprep.subr.bf16.mxu1 %v6114_v24 }
 0x9d3   :  { %v2049_v15 = vpop.f32.mrb[28].mxu1 }
 0x9d4   :  { %v2050_v54 = vadd.f32 %v2049_v15, %v6458_v40  ;;  %v5443_v61 = vpop.f32.mrb[29].mxu1 }
 0x9d6   :  { %v2053_v62 = vmax.f32 %v2050_v54, 0.0 }
 0x9d8   :  { %2054 = vst.msk [vmem:[#allocation2] sm:$0xff] %vm51_vm1, %v2053_v62  ;;  %5098 = vmatmul.mubr.msk.f32.vlgmr.msra.gmra.mrb[20].mxu0 %vm51_vm1, %v2053_v62  ;;  %5447 = vmatmul.mubr.msk.f32.vlgmr.msra.gmra.mrb[30].mxu1 %vm51_vm1, %v2053_v62 }
 0x9d9   :  { %5789 = vmatpush3.bf16.msra.mxu1 %v6395_v29  ;;  %5782 = vmatpush1.bf16.msra.mxu0 %v6393_v28 }
 0x9da   :  { %5790 = vmatprep.subr.bf16.mxu1 %v6114_v24  ;;  %5784 = vmatprep.subr.bf16.mxu0 %v6403_v35 }
 0x9db   :  { %5457 = vmatprep.mubr.msk.f32.mxu1 %vm6115_vm2, %v6113_v0  ;;  %2287 = vmatprep.mubr.f32.mxu0 %v6113_v0 }
 0x9dd   :  { %5792 = vmatpush3.bf16.msra.mxu1 %v6410_v30  ;;  %5786 = vmatpush1.bf16.msra.mxu0 %v6406_v41 }
 0x9de   :  { %5793 = vmatprep.subr.bf16.mxu0 %v6114_v24  ;;  %5104 = vmatprep.subr.msk.mxu1 %vm76_vm0, %v2462_v34 }
 0x9e0   :  { %5458 = vmatmul.mubr.msk.f32.vlgmr.msra.gmra.mrb[32].mxu1 %vm320_vm3, %v6445_v63  ;;  %5101 = vmatmul.mubr.msk.f32.vlgmr.msra.gmra.mrb[20].mxu0 %vm320_vm3, %v6445_v63 }
 0x9e1   :  { %5795 = vmatpush3.bf16.msra.mxu0 %v6427_v6  ;;  %5468 = vmatprep.mubr.msk.f32.mxu0 %vm6115_vm2, %v6113_v0 }
 0x9e2   :  { %5796 = vmatprep.subr.bf16.mxu0 %v6114_v24  ;;  %2540 = vmatprep.mubr.f32.mxu1 %v6113_v0 }
 0x9e3   :  { %5105 = vmatpush1.msk.msra.mxu1 %vm76_vm0, %v2461_v39 }
 0x9e4   :  { %5471 = vmatprep.subr.mxu1 %v6113_v0 }
 0x9e5   :  { %5798 = vmatpush3.bf16.msra.mxu0 %v6431_v11 }
 0x9e6   :  { %5807 = vmatprep.subr.bf16.mxu0 %v6114_v24 }
 0xaab   :  { %v2207_v2 = vpop.f32.mrb[30].mxu1 }
 0xaac   :  { %v5448_v57 = vpop.f32.mrb[31].mxu1  ;;  %v2208_v55 = vadd.f32 %v2207_v2, %v6495_v17 }
 0xab3   :  { %v2360_v48 = vpop.f32.mrb[32].mxu1  ;;  %v2289_v4 = vpop.f32.mrb[20].mxu0 }
 0xab4   :  { %v5939_v26 = vadd.f32 %v2289_v4, %v6487_v1  ;;  %v5459_v5 = vpop.f32.mrb[33].mxu1  ;;  %v2291_v8 = vpop.f32.mrb[21].mxu0  ;;  %v2374_v50 = vadd.f32 %v2360_v48, %v6441_v31 }
 0xab5   :  { %v5940_v12 = vadd.f32 %v2291_v8, %v6490_v16 }
 0xab6   :  { %v2366_v10 = vmul.f32 0.5, %v5939_v26 }
 0xab7   :  { %v2367_v13 = vmul.f32 0.5, %v5940_v12 }
 0xab8   :  { %6043 = vtanh.f32 %v2366_v10 }
 0xab9   :  { %6045 = vtanh.f32 %v2367_v13  ;;  %v2868_v13 = vld [vmem:[#allocation3 + $0xf8] sm:$0xf] }
 0xac2   :  { %v6044_v14 = vpop.eup %6043 }
 0xac3   :  { %v2370_v53 = vadd.f32 1.0, %v6044_v14  ;;  %v6046_v21 = vpop.eup %6045  ;;  %v2867_v14 = vld [vmem:[#allocation3 + $0xf0] sm:$0xf] }
 0xac4   :  { %v2371_v25 = vadd.f32 1.0, %v6046_v21 }
 0xac5   :  { %v2372_v18 = vmul.f32 0.5, %v2370_v53 }
 0xac6   :  { %v2373_v42 = vmul.f32 0.5, %v2371_v25 }
 0xac7   :  { %v2375_v19 = vmul.f32 %v2374_v50, %v2372_v18 }
 0xac8   :  { %v2378_v46 = vsub.f32 1.0, %v2373_v42  ;;  %v2380_v36 = vmul.f32 %v2373_v42, %v6445_v63 }
 0xac9   :  { %v2376_v22 = vadd.f32 %v2375_v19, %v2208_v55  ;;  %v2869_v19 = vld [vmem:[#allocation3 + $0x100] sm:$0xf] }
 0xacb   :  { %6047 = vtanh.f32 %v2376_v22 }
 0xad5   :  { %v6048_v27 = vpop.eup %6047 }
 0xad6   :  { %v2379_v33 = vmul.f32 %v6048_v27, %v2378_v46 }
 0xad8   :  { %v2381_v38 = vadd.f32 %v2380_v36, %v2379_v33 }
 0xada   :  { %5469 = vmatmul.mubr.msk.f32.vlgmr.msra.gmra.mrb[22].mxu0 %vm320_vm3, %v2381_v38 }
 0xadb   :  { %5809 = vmatpush3.bf16.msra.mxu0 %v6395_v29  ;;  %5484 = vmatprep.mubr.msk.f32.mxu0 %vm6115_vm2, %v6113_v0 }
 0xadc   :  { %5810 = vmatprep.subr.bf16.mxu0 %v6114_v24 }
 0xadf   :  { %5812 = vmatpush3.bf16.msra.mxu0 %v6410_v30 }
 0xae0   :  { %5813 = vmatprep.subr.bf16.mxu0 %v6114_v24 }
 0xae2   :  { %5485 = vmatmul.mubr.msk.f32.vlgmr.msra.gmra.mrb[24].mxu0 %vm320_vm3, %v2381_v38 }
 0xae3   :  { %5815 = vmatpush3.bf16.msra.mxu0 %v6427_v6  ;;  %5495 = vmatprep.mubr.msk.f32.mxu0 %vm6115_vm2, %v6113_v0 }
 0xae4   :  { %5816 = vmatprep.subr.bf16.mxu0 %v6114_v24 }
 0xae7   :  { %5818 = vmatpush3.bf16.msra.mxu0 %v6431_v11 }
 0xae8   :  { %5827 = vmatprep.subr.bf16.mxu0 %v6114_v24 }
 0xbad   :  { %v2455_v43 = vpop.f32.mrb[22].mxu0 }
 0xbae   :  { %v2456_v7 = vadd.f32 %v2455_v43, %v6458_v40  ;;  %v5470_v45 = vpop.f32.mrb[23].mxu0 }
 0xbb0   :  { %v2459_v47 = vmax.f32 %v2456_v7, 0.0 }
 0xbb2   :  { %2460 = vst.msk [vmem:[#allocation2 + $0x8] sm:$0xff] %vm51_vm1, %v2459_v47  ;;  %5106 = vmatmul.mubr.msk.f32.vlgmr.msra.gmra.mrb[34].mxu1 %vm51_vm1, %v2459_v47 }
 0xbb3   :  { %5472 = vmatpush3.msk.msra.mxu1 %vm76_vm0, %v2463_v49  ;;  %5473 = vmatprep.mubr.msk.f32.mxu1 %vm6115_vm2, %v6113_v0 }
 0xbb4   :  { %5800 = vmatprep.subr.bf16.mxu1 %v6387_v23 }
 0xbb5   :  { %v2766_v51 = vpop.f32.mrb[24].mxu0 }
 0xbb6   :  { %v5486_v52 = vpop.f32.mrb[25].mxu0  ;;  %5474 = vmatmul.mubr.msk.f32.vlgmr.msra.gmra.mrb[36].mxu1 %vm51_vm1, %v2459_v47  ;;  %v2780_v54 = vadd.f32 %v2766_v51, %v6441_v31 }
 0xbb7   :  { %5802 = vmatpush1.bf16.msra.mxu1 %v6393_v28  ;;  %2693 = vmatprep.mubr.f32.mxu1 %v6113_v0 }
 0xbb8   :  { %5804 = vmatprep.subr.bf16.mxu1 %v6403_v35 }
 0xbbb   :  { %5806 = vmatpush1.bf16.msra.mxu1 %v6406_v41 }
 0xbbc   :  { %5112 = vmatprep.subr.msk.mxu1 %vm76_vm0, %v2868_v13 }
 0xbbe   :  { %5109 = vmatmul.mubr.msk.f32.vlgmr.msra.gmra.mrb[34].mxu1 %vm320_vm3, %v2381_v38 }
 0xbbf   :  { %2946 = vmatprep.mubr.f32.mxu1 %v6113_v0  ;;  %5113 = vmatpush1.msk.msra.mxu1 %vm76_vm0, %v2867_v14 }
 0xbc0   :  { %5498 = vmatprep.subr.mxu1 %v6113_v0 }
 0xc89   :  { %v2613_v56 = vpop.f32.mrb[36].mxu1 }
 0xc8a   :  { %v5475_v58 = vpop.f32.mrb[37].mxu1  ;;  %v2614_v62 = vadd.f32 %v2613_v56, %v6495_v17 }
 0xc91   :  { %v2695_v59 = vpop.f32.mrb[34].mxu1 }
 0xc92   :  { %v5941_v37 = vadd.f32 %v2695_v59, %v6487_v1  ;;  %v2697_v63 = vpop.f32.mrb[35].mxu1 }
 0xc93   :  { %v5942_v60 = vadd.f32 %v2697_v63, %v6490_v16 }
 0xc94   :  { %v2772_v44 = vmul.f32 0.5, %v5941_v37 }
 0xc95   :  { %v2773_v9 = vmul.f32 0.5, %v5942_v60 }
 0xc96   :  { %6049 = vtanh.f32 %v2772_v44 }
 0xc97   :  { %6051 = vtanh.f32 %v2773_v9  ;;  %v3274_v9 = vld [vmem:[#allocation3 + $0xf8] sm:$0xf] }
 0xca0   :  { %v6050_v20 = vpop.eup %6049 }
 0xca1   :  { %v2776_v15 = vadd.f32 1.0, %v6050_v20  ;;  %v6052_v57 = vpop.eup %6051  ;;  %v3273_v20 = vld [vmem:[#allocation3 + $0xf0] sm:$0xf] }
 0xca2   :  { %v2777_v48 = vadd.f32 1.0, %v6052_v57 }
 0xca3   :  { %v2778_v61 = vmul.f32 0.5, %v2776_v15 }
 0xca4   :  { %v2779_v4 = vmul.f32 0.5, %v2777_v48 }
 0xca5   :  { %v2781_v2 = vmul.f32 %v2780_v54, %v2778_v61 }
 0xca6   :  { %v2784_v26 = vsub.f32 1.0, %v2779_v4  ;;  %v2786_v10 = vmul.f32 %v2779_v4, %v2381_v38 }
 0xca7   :  { %v2782_v3 = vadd.f32 %v2781_v2, %v2614_v62  ;;  %v3275_v2 = vld [vmem:[#allocation3 + $0x100] sm:$0xf] }
 0xca9   :  { %6053 = vtanh.f32 %v2782_v3 }
 0xcb3   :  { %v6054_v5 = vpop.eup %6053 }
 0xcb4   :  { %v2785_v8 = vmul.f32 %v6054_v5, %v2784_v26 }
 0xcb6   :  { %v2787_v12 = vadd.f32 %v2786_v10, %v2785_v8 }
 0xcb8   :  { %5496 = vmatmul.mubr.msk.f32.vlgmr.msra.gmra.mrb[26].mxu0 %vm320_vm3, %v2787_v12 }
 0xcb9   :  { %5829 = vmatpush3.bf16.msra.mxu0 %v6395_v29  ;;  %5511 = vmatprep.mubr.msk.f32.mxu0 %vm6115_vm2, %v6113_v0 }
 0xcba   :  { %5830 = vmatprep.subr.bf16.mxu0 %v6114_v24 }
 0xcbd   :  { %5832 = vmatpush3.bf16.msra.mxu0 %v6410_v30 }
 0xcbe   :  { %5833 = vmatprep.subr.bf16.mxu0 %v6114_v24 }
 0xcc0   :  { %5512 = vmatmul.mubr.msk.f32.vlgmr.msra.gmra.mrb[28].mxu0 %vm320_vm3, %v2787_v12 }
 0xcc1   :  { %5835 = vmatpush3.bf16.msra.mxu0 %v6427_v6  ;;  %5522 = vmatprep.mubr.msk.f32.mxu0 %vm6115_vm2, %v6113_v0 }
 0xcc2   :  { %5836 = vmatprep.subr.bf16.mxu0 %v6114_v24 }
 0xcc5   :  { %5838 = vmatpush3.bf16.msra.mxu0 %v6431_v11 }
 0xcc6   :  { %5847 = vmatprep.subr.bf16.mxu0 %v6114_v24 }
 0xd8b   :  { %v2861_v53 = vpop.f32.mrb[26].mxu0 }
 0xd8c   :  { %v2862_v50 = vadd.f32 %v2861_v53, %v6458_v40  ;;  %v5497_v18 = vpop.f32.mrb[27].mxu0 }
 0xd8e   :  { %v2865_v55 = vmax.f32 %v2862_v50, 0.0 }
 0xd90   :  { %2866 = vst.msk [vmem:[#allocation2 + $0x10] sm:$0xff] %vm51_vm1, %v2865_v55  ;;  %5114 = vmatmul.mubr.msk.f32.vlgmr.msra.gmra.mrb[38].mxu1 %vm51_vm1, %v2865_v55 }
 0xd91   :  { %5499 = vmatpush3.msk.msra.mxu1 %vm76_vm0, %v2869_v19  ;;  %5500 = vmatprep.mubr.msk.f32.mxu1 %vm6115_vm2, %v6113_v0 }
 0xd92   :  { %5820 = vmatprep.subr.bf16.mxu1 %v6387_v23 }
 0xd93   :  { %v3172_v21 = vpop.f32.mrb[28].mxu0 }
 0xd94   :  { %v5513_v22 = vpop.f32.mrb[29].mxu0  ;;  %5501 = vmatmul.mubr.msk.f32.vlgmr.msra.gmra.mrb[40].mxu1 %vm51_vm1, %v2865_v55  ;;  %v3186_v7 = vadd.f32 %v3172_v21, %v6441_v31 }
 0xd95   :  { %5822 = vmatpush1.bf16.msra.mxu1 %v6393_v28  ;;  %3099 = vmatprep.mubr.f32.mxu1 %v6113_v0 }
 0xd96   :  { %5824 = vmatprep.subr.bf16.mxu1 %v6403_v35 }
 0xd99   :  { %5826 = vmatpush1.bf16.msra.mxu1 %v6406_v41 }
 0xd9a   :  { %5120 = vmatprep.subr.msk.mxu1 %vm76_vm0, %v3274_v9 }
 0xd9c   :  { %5117 = vmatmul.mubr.msk.f32.vlgmr.msra.gmra.mrb[38].mxu1 %vm320_vm3, %v2787_v12 }
 0xd9d   :  { %3352 = vmatprep.mubr.f32.mxu1 %v6113_v0  ;;  %5121 = vmatpush1.msk.msra.mxu1 %vm76_vm0, %v3273_v20 }
 0xd9e   :  { %5525 = vmatprep.subr.mxu1 %v6113_v0 }
 0xe67   :  { %v3019_v25 = vpop.f32.mrb[40].mxu1 }
 0xe68   :  { %v5502_v42 = vpop.f32.mrb[41].mxu1  ;;  %v3020_v47 = vadd.f32 %v3019_v25, %v6495_v17 }
 0xe6f   :  { %v3101_v46 = vpop.f32.mrb[38].mxu1 }
 0xe70   :  { %v5943_v27 = vadd.f32 %v3101_v46, %v6487_v1  ;;  %v3103_v33 = vpop.f32.mrb[39].mxu1 }
 0xe71   :  { %v5944_v38 = vadd.f32 %v3103_v33, %v6490_v16 }
 0xe72   :  { %v3178_v36 = vmul.f32 0.5, %v5943_v27 }
 0xe73   :  { %v3179_v34 = vmul.f32 0.5, %v5944_v38 }
 0xe74   :  { %6055 = vtanh.f32 %v3178_v36 }
 0xe75   :  { %6057 = vtanh.f32 %v3179_v34  ;;  %v3680_v34 = vld [vmem:[#allocation3 + $0xf8] sm:$0xf] }
 0xe7e   :  { %v6056_v39 = vpop.eup %6055 }
 0xe7f   :  { %v3182_v43 = vadd.f32 1.0, %v6056_v39  ;;  %v6058_v51 = vpop.eup %6057  ;;  %v3679_v39 = vld [vmem:[#allocation3 + $0xf0] sm:$0xf] }
 0xe80   :  { %v3183_v56 = vadd.f32 1.0, %v6058_v51 }
 0xe81   :  { %v3184_v45 = vmul.f32 0.5, %v3182_v43 }
 0xe82   :  { %v3185_v58 = vmul.f32 0.5, %v3183_v56 }
 0xe83   :  { %v3187_v49 = vmul.f32 %v3186_v7, %v3184_v45 }
 0xe84   :  { %v3190_v59 = vsub.f32 1.0, %v3185_v58  ;;  %v3192_v44 = vmul.f32 %v3185_v58, %v2787_v12 }
 0xe85   :  { %v3188_v52 = vadd.f32 %v3187_v49, %v3020_v47  ;;  %v3681_v49 = vld [vmem:[#allocation3 + $0x100] sm:$0xf] }
 0xe87   :  { %6059 = vtanh.f32 %v3188_v52 }
 0xe91   :  { %v6060_v37 = vpop.eup %6059 }
 0xe92   :  { %v3191_v63 = vmul.f32 %v6060_v37, %v3190_v59 }
 0xe94   :  { %v3193_v60 = vadd.f32 %v3192_v44, %v3191_v63 }
 0xe96   :  { %5523 = vmatmul.mubr.msk.f32.vlgmr.msra.gmra.mrb[30].mxu0 %vm320_vm3, %v3193_v60 }
 0xe97   :  { %5849 = vmatpush3.bf16.msra.mxu0 %v6395_v29  ;;  %5538 = vmatprep.mubr.msk.f32.mxu0 %vm6115_vm2, %v6113_v0 }
 0xe98   :  { %5850 = vmatprep.subr.bf16.mxu0 %v6114_v24 }
 0xe9b   :  { %5852 = vmatpush3.bf16.msra.mxu0 %v6410_v30 }
 0xe9c   :  { %5853 = vmatprep.subr.bf16.mxu0 %v6114_v24 }
 0xe9e   :  { %5539 = vmatmul.mubr.msk.f32.vlgmr.msra.gmra.mrb[32].mxu0 %vm320_vm3, %v3193_v60 }
 0xe9f   :  { %5855 = vmatpush3.bf16.msra.mxu0 %v6427_v6  ;;  %5549 = vmatprep.mubr.msk.f32.mxu0 %vm6115_vm2, %v6113_v0 }
 0xea0   :  { %5856 = vmatprep.subr.bf16.mxu0 %v6114_v24 }
 0xea3   :  { %5858 = vmatpush3.bf16.msra.mxu0 %v6431_v11 }
 0xea4   :  { %5867 = vmatprep.subr.bf16.mxu0 %v6114_v24 }
 0xf69   :  { %v3267_v15 = vpop.f32.mrb[30].mxu0 }
 0xf6a   :  { %v3268_v54 = vadd.f32 %v3267_v15, %v6458_v40  ;;  %v5524_v61 = vpop.f32.mrb[31].mxu0 }
 0xf6c   :  { %v3271_v62 = vmax.f32 %v3268_v54, 0.0 }
 0xf6e   :  { %3272 = vst.msk [vmem:[#allocation2 + $0x18] sm:$0xff] %vm51_vm1, %v3271_v62  ;;  %5122 = vmatmul.mubr.msk.f32.vlgmr.msra.gmra.mrb[42].mxu1 %vm51_vm1, %v3271_v62 }
 0xf6f   :  { %5526 = vmatpush3.msk.msra.mxu1 %vm76_vm0, %v3275_v2  ;;  %5527 = vmatprep.mubr.msk.f32.mxu1 %vm6115_vm2, %v6113_v0 }
 0xf70   :  { %5840 = vmatprep.subr.bf16.mxu1 %v6387_v23 }
 0xf71   :  { %v3578_v57 = vpop.f32.mrb[32].mxu0 }
 0xf72   :  { %v5540_v3 = vpop.f32.mrb[33].mxu0  ;;  %5528 = vmatmul.mubr.msk.f32.vlgmr.msra.gmra.mrb[44].mxu1 %vm51_vm1, %v3271_v62  ;;  %v3592_v50 = vadd.f32 %v3578_v57, %v6441_v31 }
 0xf73   :  { %5842 = vmatpush1.bf16.msra.mxu1 %v6393_v28  ;;  %3505 = vmatprep.mubr.f32.mxu1 %v6113_v0 }
 0xf74   :  { %5844 = vmatprep.subr.bf16.mxu1 %v6403_v35 }
 0xf77   :  { %5846 = vmatpush1.bf16.msra.mxu1 %v6406_v41 }
 0xf78   :  { %5128 = vmatprep.subr.msk.mxu1 %vm76_vm0, %v3680_v34 }
 0xf7a   :  { %5125 = vmatmul.mubr.msk.f32.vlgmr.msra.gmra.mrb[42].mxu1 %vm320_vm3, %v3193_v60 }
 0xf7b   :  { %3758 = vmatprep.mubr.f32.mxu1 %v6113_v0  ;;  %5129 = vmatpush1.msk.msra.mxu1 %vm76_vm0, %v3679_v39 }
 0xf7c   :  { %5552 = vmatprep.subr.mxu1 %v6113_v0 }
0x1045   :  { %v3425_v48 = vpop.f32.mrb[44].mxu1 }
0x1046   :  { %v5529_v4 = vpop.f32.mrb[45].mxu1  ;;  %v3426_v55 = vadd.f32 %v3425_v48, %v6495_v17 }
0x104d   :  { %v3507_v26 = vpop.f32.mrb[42].mxu1 }
0x104e   :  { %v5945_v5 = vadd.f32 %v3507_v26, %v6487_v1  ;;  %v3509_v8 = vpop.f32.mrb[43].mxu1 }
0x104f   :  { %v5946_v12 = vadd.f32 %v3509_v8, %v6490_v16  ;;  %v4242_v8 = vld [vmem:[#allocation3 + $0x68] sm:$0xff] }
0x1050   :  { %v3584_v10 = vmul.f32 0.5, %v5945_v5 }
0x1051   :  { %v3585_v13 = vmul.f32 0.5, %v5946_v12 }
0x1052   :  { %6061 = vtanh.f32 %v3584_v10 }
0x1053   :  { %6063 = vtanh.f32 %v3585_v13 }
0x105c   :  { %v6062_v14 = vpop.eup %6061 }
0x105d   :  { %v3588_v53 = vadd.f32 1.0, %v6062_v14  ;;  %v6064_v21 = vpop.eup %6063  ;;  %v4087_v14 = vld [vmem:[#allocation3 + $0x100] sm:$0xf] }
0x105e   :  { %v3589_v25 = vadd.f32 1.0, %v6064_v21 }
0x105f   :  { %v3590_v18 = vmul.f32 0.5, %v3588_v53 }
0x1060   :  { %v3591_v42 = vmul.f32 0.5, %v3589_v25  ;;  %v4250_v25 = vld [vmem:[#allocation3 + $0xa8] sm:$0xff] }
0x1061   :  { %v3593_v19 = vmul.f32 %v3592_v50, %v3590_v18  ;;  %v4244_v50 = vld [vmem:[#allocation3 + $0x78] sm:$0xff] }
0x1062   :  { %v3596_v46 = vsub.f32 1.0, %v3591_v42  ;;  %v3598_v36 = vmul.f32 %v3591_v42, %v3193_v60  ;;  %v4248_v18 = vld [vmem:[#allocation3 + $0x98] sm:$0xff] }
0x1063   :  { %v3594_v22 = vadd.f32 %v3593_v19, %v3426_v55  ;;  %v4251_v55 = vld [vmem:[#allocation3 + $0xb0] sm:$0xff] }
0x1064   :  { %v6672_v21 = vpack.c.bf16 %v4251_v55, %v4248_v18  ;;  %v4820_v55 = vld [vmem:[#allocation3 + $0x138] sm:$0xff] }
0x1065   :  { %6065 = vtanh.f32 %v3594_v22  ;;  %v4247_v22 = vld [vmem:[#allocation3 + $0x90] sm:$0xff] }
0x106f   :  { %v6066_v27 = vpop.eup %6065 }
0x1070   :  { %v3597_v33 = vmul.f32 %v6066_v27, %v3596_v46  ;;  %v6676_v27 = vpack.c.bf16 %v4250_v25, %v4247_v22 }
0x1072   :  { %v3599_v38 = vadd.f32 %v3598_v36, %v3597_v33 }
0x1074   :  { %5550 = vmatmul.mubr.msk.f32.vlgmr.msra.gmra.mrb[34].mxu0 %vm320_vm3, %v3599_v38 }
0x1075   :  { %5869 = vmatpush3.bf16.msra.mxu0 %v6395_v29  ;;  %5565 = vmatprep.mubr.msk.f32.mxu0 %vm6115_vm2, %v6113_v0 }
0x1076   :  { %5870 = vmatprep.subr.bf16.mxu0 %v6114_v24 }
0x1079   :  { %5872 = vmatpush3.bf16.msra.mxu0 %v6410_v30 }
0x107a   :  { %5873 = vmatprep.subr.bf16.mxu0 %v6114_v24 }
0x107c   :  { %5566 = vmatmul.mubr.msk.f32.vlgmr.msra.gmra.mrb[36].mxu0 %vm320_vm3, %v3599_v38 }
0x107d   :  { %5875 = vmatpush3.bf16.msra.mxu0 %v6427_v6  ;;  %5576 = vmatprep.mubr.msk.f32.mxu0 %vm6115_vm2, %v6113_v0 }
0x107e   :  { %5876 = vmatprep.subr.bf16.mxu0 %v6114_v24 }
0x1081   :  { %5878 = vmatpush3.bf16.msra.mxu0 %v6431_v11 }
0x1082   :  { %5887 = vmatprep.subr.bf16.mxu0 %v6114_v24 }
0x1147   :  { %v3673_v43 = vpop.f32.mrb[34].mxu0 }
0x1148   :  { %v3674_v7 = vadd.f32 %v3673_v43, %v6458_v40  ;;  %v5551_v45 = vpop.f32.mrb[35].mxu0 }
0x114a   :  { %v3677_v47 = vmax.f32 %v3674_v7, 0.0 }
0x114c   :  { %3678 = vst.msk [vmem:[#allocation2 + $0x20] sm:$0xff] %vm51_vm1, %v3677_v47  ;;  %5130 = vmatmul.mubr.msk.f32.vlgmr.msra.gmra.mrb[46].mxu1 %vm51_vm1, %v3677_v47 }
0x114d   :  { %5553 = vmatpush3.msk.msra.mxu1 %vm76_vm0, %v3681_v49  ;;  %5554 = vmatprep.mubr.msk.f32.mxu1 %vm6115_vm2, %v6113_v0 }
0x114e   :  { %5860 = vmatprep.subr.bf16.mxu1 %v6387_v23 }
0x114f   :  { %v3984_v51 = vpop.f32.mrb[36].mxu0 }
0x1150   :  { %v5567_v52 = vpop.f32.mrb[37].mxu0  ;;  %5555 = vmatmul.mubr.msk.f32.vlgmr.msra.gmra.mrb[48].mxu1 %vm51_vm1, %v3677_v47 }
0x1151   :  { %5862 = vmatpush1.bf16.msra.mxu1 %v6393_v28  ;;  %3911 = vmatprep.mubr.f32.mxu1 %v6113_v0 }
0x1152   :  { %5864 = vmatprep.subr.bf16.mxu1 %v6403_v35 }
0x1155   :  { %5866 = vmatpush1.bf16.msra.mxu1 %v6406_v41  ;;  %v3998_v41 = vadd.f32 %v3984_v51, %v6441_v31 }
0x1158   :  { %5133 = vmatmul.mubr.msk.f32.vlgmr.msra.gmra.mrb[46].mxu1 %vm320_vm3, %v3599_v38 }
0x1159   :  { %4164 = vmatprep.mubr.f32.mxu1 %v6113_v0 }
0x1223   :  { %v3831_v56 = vpop.f32.mrb[48].mxu1 }
0x1224   :  { %v5556_v58 = vpop.f32.mrb[49].mxu1  ;;  %v3832_v20 = vadd.f32 %v3831_v56, %v6495_v17 }
0x122b   :  { %v3913_v59 = vpop.f32.mrb[46].mxu1 }
0x122c   :  { %v5947_v23 = vadd.f32 %v3913_v59, %v6487_v1  ;;  %v3915_v37 = vpop.f32.mrb[47].mxu1 }
0x122d   :  { %v5948_v44 = vadd.f32 %v3915_v37, %v6490_v16 }
0x122e   :  { %v3990_v63 = vmul.f32 0.5, %v5947_v23 }
0x122f   :  { %v3991_v28 = vmul.f32 0.5, %v5948_v44 }
0x1230   :  { %6067 = vtanh.f32 %v3990_v63 }
0x1231   :  { %6069 = vtanh.f32 %v3991_v28  ;;  %v4649_v28 = vld [vmem:[#allocation3 + $0x70] sm:$0xff] }
0x123a   :  { %v6068_v60 = vpop.eup %6067 }
0x123b   :  { %v3994_v35 = vadd.f32 1.0, %v6068_v60  ;;  %v6070_v54 = vpop.eup %6069  ;;  %v4652_v60 = vld [vmem:[#allocation3 + $0x88] sm:$0xff] }
0x123c   :  { %v3995_v62 = vadd.f32 1.0, %v6070_v54  ;;  %v4655_v54 = vld [vmem:[#allocation3 + $0xa0] sm:$0xff] }
0x123d   :  { %v3996_v9 = vmul.f32 0.5, %v3994_v35 }
0x123e   :  { %v3997_v2 = vmul.f32 0.5, %v3995_v62 }
0x123f   :  { %v3999_v15 = vmul.f32 %v3998_v41, %v3996_v9 }
0x1240   :  { %v4002_v57 = vsub.f32 1.0, %v3997_v2  ;;  %v4004_v4 = vmul.f32 %v3997_v2, %v3599_v38  ;;  %v4492_v2 = vld [vmem:[#allocation3 + $0xf8] sm:$0xf] }
0x1241   :  { %v4000_v61 = vadd.f32 %v3999_v15, %v3832_v20  ;;  %v5908_v20 = vpack.c.bf16 %v4652_v60, %v4649_v28 }
0x1243   :  { %6071 = vtanh.f32 %v4000_v61  ;;  %v4658_v61 = vld [vmem:[#allocation3 + $0xb8] sm:$0xff] }
0x1244   :  { %v5911_v62 = vpack.c.bf16 %v4658_v61, %v4655_v54 }
0x124d   :  { %v6072_v3 = vpop.eup %6071 }
0x124e   :  { %v4003_v48 = vmul.f32 %v6072_v3, %v4002_v57  ;;  %v4491_v57 = vld [vmem:[#allocation3 + $0xf0] sm:$0xf] }
0x1250   :  { %v6640_v26 = vadd.f32 %v4004_v4, %v4003_v48 }
0x1252   :  { %5577 = vmatmul.mubr.msk.f32.vlgmr.msra.gmra.mrb[38].mxu0 %vm320_vm3, %v6640_v26 }
0x1253   :  { %5889 = vmatpush3.bf16.msra.mxu0 %v6395_v29  ;;  %5592 = vmatprep.mubr.msk.f32.mxu0 %vm6115_vm2, %v6113_v0  ;;  %v4086_v29 = vld [vmem:[#allocation3 + $0xf8] sm:$0xf] }
0x1254   :  { %5890 = vmatprep.subr.bf16.mxu0 %v6114_v24  ;;  %5136 = vmatprep.subr.msk.mxu1 %vm76_vm0, %v4086_v29  ;;  %v4493_v29 = vld [vmem:[#allocation3 + $0x100] sm:$0xf] }
0x1257   :  { %5892 = vmatpush3.bf16.msra.mxu0 %v6410_v30  ;;  %v4085_v30 = vld [vmem:[#allocation3 + $0xf0] sm:$0xf] }
0x1258   :  { %5893 = vmatprep.subr.bf16.mxu0 %v6114_v24  ;;  %5137 = vmatpush1.msk.msra.mxu1 %vm76_vm0, %v4085_v30 }
0x1259   :  { %5579 = vmatprep.subr.mxu1 %v6113_v0 }
0x125a   :  { %5593 = vmatmul.mubr.msk.f32.vlgmr.msra.gmra.mrb[40].mxu0 %vm320_vm3, %v6640_v26 }
0x125b   :  { %5895 = vmatpush3.bf16.msra.mxu0 %v6427_v6  ;;  %5603 = vmatprep.mubr.msk.f32.mxu0 %vm6115_vm2, %v6113_v0  ;;  %v4245_v6 = vld [vmem:[#allocation3 + $0x80] sm:$0xff] }
0x125c   :  { %5896 = vmatprep.subr.bf16.mxu0 %v6114_v24  ;;  %v6662_v53 = vpack.c.bf16 %v4245_v6, %v4242_v8  ;;  %v4905_v8 = vld [vmem:[#allocation3 + $0x168] sm:$0xf]  ;;  %v4897_v6 = vld [vmem:[#allocation2] sm:$0xff] }
0x125f   :  { %5898 = vmatpush3.bf16.msra.mxu0 %v6431_v11  ;;  %v4241_v11 = vld [vmem:[#allocation3 + $0x60] sm:$0xff] }
0x1260   :  { %5907 = vmatprep.subr.bf16.mxu0 %v6114_v24  ;;  %v6669_v19 = vpack.c.bf16 %v4244_v50, %v4241_v11  ;;  %v4818_v11 = vld [vmem:[#allocation3 + $0x108] sm:$0xff]  ;;  %v4819_v50 = vld [vmem:[#allocation3 + $0x120] sm:$0xff] }
0x1261   :  { %v5914_v18 = vpack.c.bf16 %v4819_v50, %v4818_v11 }
0x1325   :  { %v4079_v5 = vpop.f32.mrb[38].mxu0 }
0x1326   :  { %v4080_v10 = vadd.f32 %v4079_v5, %v6458_v40  ;;  %v5578_v12 = vpop.f32.mrb[39].mxu0 }
0x1327   :  { %v4899_v12 = vld [vmem:[#allocation2 + $0x10] sm:$0xff] }
0x1328   :  { %v4083_v13 = vmax.f32 %v4080_v10, 0.0  ;;  %v4898_v10 = vld [vmem:[#allocation2 + $0x8] sm:$0xff] }
0x132a   :  { %4084 = vst.msk [vmem:[#allocation2 + $0x28] sm:$0xff] %vm51_vm1, %v4083_v13  ;;  %5138 = vmatmul.mubr.msk.f32.vlgmr.msra.gmra.mrb[50].mxu1 %vm51_vm1, %v4083_v13 }
0x132b   :  { %5580 = vmatpush3.msk.msra.mxu1 %vm76_vm0, %v4087_v14  ;;  %5581 = vmatprep.mubr.msk.f32.mxu1 %vm6115_vm2, %v6113_v0 }
0x132c   :  { %5880 = vmatprep.subr.bf16.mxu1 %v6662_v53 }
0x132d   :  { %v4390_v42 = vpop.f32.mrb[40].mxu0 }
0x132e   :  { %v5594_v46 = vpop.f32.mrb[41].mxu0  ;;  %5582 = vmatmul.mubr.msk.f32.vlgmr.msra.gmra.mrb[52].mxu1 %vm51_vm1, %v4083_v13  ;;  %v4404_v51 = vadd.f32 %v4390_v42, %v6441_v31  ;;  %v4901_v13 = vld [vmem:[#allocation2 + $0x20] sm:$0xff]  ;;  %v4908_v42 = vsub.s32 5, %v6237_v32 }
0x132f   :  { %5882 = vmatpush1.bf16.msra.mxu1 %v6669_v19  ;;  %4317 = vmatprep.mubr.f32.mxu1 %v6113_v0 }
0x1330   :  { %5884 = vmatprep.subr.bf16.mxu1 %v6672_v21 }
0x1331   :  { %v4902_v14 = vld [vmem:[#allocation2 + $0x28] sm:$0xff] }
0x1333   :  { %5886 = vmatpush1.bf16.msra.mxu1 %v6676_v27 }
0x1334   :  { %5144 = vmatprep.subr.msk.mxu1 %vm76_vm0, %v4492_v2 }
0x1336   :  { %5141 = vmatmul.mubr.msk.f32.vlgmr.msra.gmra.mrb[50].mxu1 %vm320_vm3, %v6640_v26 }
0x1337   :  { %4570 = vmatprep.mubr.f32.mxu1 %v6113_v0  ;;  %5145 = vmatpush1.msk.msra.mxu1 %vm76_vm0, %v4491_v57 }
0x1338   :  { %5606 = vmatprep.subr.mxu1 %v6113_v0 }
0x1401   :  { %v4237_v33 = vpop.f32.mrb[52].mxu1 }
0x1402   :  { %v5583_v36 = vpop.f32.mrb[53].mxu1  ;;  %v4238_v56 = vadd.f32 %v4237_v33, %v6495_v17 }
0x1403   :  { %v6085_v36 = vld [vmem:[#allocation3 + $0x180] sm:$0xff] }
0x1409   :  { %v4319_v38 = vpop.f32.mrb[50].mxu1 }
0x140a   :  { %v5949_v34 = vadd.f32 %v4319_v38, %v6487_v1  ;;  %v4321_v39 = vpop.f32.mrb[51].mxu1  ;;  %v4909_v38 = vrot.slane %v6085_v36, %v4908_v42 }
0x140b   :  { %v5950_v7 = vadd.f32 %v4321_v39, %v6490_v16 }
0x140c   :  { %v4396_v43 = vmul.f32 0.5, %v5949_v34 }
0x140d   :  { %v4397_v45 = vmul.f32 0.5, %v5950_v7 }
0x140e   :  { %6073 = vtanh.f32 %v4396_v43 }
0x140f   :  { %6075 = vtanh.f32 %v4397_v45 }
0x1418   :  { %v6074_v47 = vpop.eup %6073 }
0x1419   :  { %v4400_v49 = vadd.f32 1.0, %v6074_v47  ;;  %v6076_v59 = vpop.eup %6075 }
0x141a   :  { %v4401_v37 = vadd.f32 1.0, %v6076_v59 }
0x141b   :  { %v4402_v52 = vmul.f32 0.5, %v4400_v49 }
0x141c   :  { %v4403_v63 = vmul.f32 0.5, %v4401_v37 }
0x141d   :  { %v4405_v58 = vmul.f32 %v4404_v51, %v4402_v52 }
0x141e   :  { %v4408_v44 = vsub.f32 1.0, %v4403_v63  ;;  %v4410_v9 = vmul.f32 %v4403_v63, %v6640_v26 }
0x141f   :  { %v4406_v23 = vadd.f32 %v4405_v58, %v4238_v56 }
0x1421   :  { %6077 = vtanh.f32 %v4406_v23 }
0x142b   :  { %v6078_v35 = vpop.eup %6077 }
0x142c   :  { %v4409_v41 = vmul.f32 %v6078_v35, %v4408_v44 }
0x142e   :  { %v6689_v15 = vadd.f32 %v4410_v9, %v4409_v41 }
0x1430   :  { %5604 = vmatmul.mubr.msk.f32.vlgmr.msra.gmra.mrb[42].mxu0 %vm320_vm3, %v6689_v15 }
0x1431   :  { %5909 = vmatpush3.bf16.msra.mxu0 %v5908_v20  ;;  %5619 = vmatprep.mubr.msk.f32.mxu0 %vm6115_vm2, %v6113_v0 }
0x1432   :  { %5910 = vmatprep.subr.bf16.mxu0 %v6114_v24 }
0x1435   :  { %5912 = vmatpush3.bf16.msra.mxu0 %v5911_v62 }
0x1436   :  { %5913 = vmatprep.subr.bf16.mxu0 %v6114_v24 }
0x1438   :  { %5620 = vmatmul.mubr.msk.f32.vlgmr.msra.gmra.mrb[44].mxu0 %vm320_vm3, %v6689_v15 }
0x1439   :  { %5630 = vmatprep.mubr.msk.f32.mxu0 %vm6115_vm2, %v6113_v0  ;;  %5915 = vmatpush3.bf16.msra.mxu0 %v5914_v18 }
0x143a   :  { %5916 = vmatprep.subr.bf16.mxu0 %v6114_v24 }
0x1503   :  { %v4485_v3 = vpop.f32.mrb[42].mxu0 }
0x1504   :  { %v4486_v48 = vadd.f32 %v4485_v3, %v6458_v40  ;;  %v5605_v4 = vpop.f32.mrb[43].mxu0 }
0x1506   :  { %v4489_v26 = vmax.f32 %v4486_v48, 0.0 }
0x1508   :  { %4490 = vst.msk [vmem:[#allocation2 + $0x30] sm:$0xff] %vm51_vm1, %v4489_v26  ;;  %5146 = vmatmul.mubr.msk.f32.vlgmr.msra.gmra.mrb[54].mxu1 %vm51_vm1, %v4489_v26 }
0x1509   :  { %5607 = vmatpush3.msk.msra.mxu1 %vm76_vm0, %v4493_v29  ;;  %5608 = vmatprep.mubr.msk.f32.mxu1 %vm6115_vm2, %v6113_v0 }
0x150a   :  { %5900 = vmatprep.subr.bf16.mxu1 %v6662_v53 }
0x150b   :  { %v6711_v30 = vpop.f32.mrb[44].mxu0 }
0x150c   :  { %v5621_v5 = vpop.f32.mrb[45].mxu0  ;;  %5609 = vmatmul.mubr.msk.f32.vlgmr.msra.gmra.mrb[56].mxu1 %vm51_vm1, %v4489_v26  ;;  %v4810_v37 = vadd.f32 %v6711_v30, %v6441_v31 }
0x150d   :  { %5902 = vmatpush1.bf16.msra.mxu1 %v6669_v19  ;;  %4723 = vmatprep.mubr.f32.mxu1 %v6113_v0  ;;  %v4900_v0 = vld [vmem:[#allocation2 + $0x18] sm:$0xff]  ;;  %v4821_v19 = vld [vmem:[#allocation3 + $0x150] sm:$0xff] }
0x150e   :  { %5904 = vmatprep.subr.bf16.mxu1 %v6672_v21  ;;  %v5917_v21 = vpack.c.bf16 %v4821_v19, %v4820_v55 }
0x150f   :  { %v4903_v53 = vld [vmem:[#allocation2 + $0x30] sm:$0xff] }
0x1510   :  { %5918 = vmatpush3.bf16.msra.mxu0 %v5917_v21 }
0x1511   :  { %5906 = vmatpush1.bf16.msra.mxu1 %v6676_v27 }
0x1512   :  { %5633 = vmatprep.subr.msk.mxu1 %vm76_vm0, %v4905_v8 }
0x1514   :  { %5149 = vmatmul.mubr.msk.f32.vlgmr.msra.gmra.mrb[54].mxu1 %vm320_vm3, %v6689_v15 }
0x1515   :  { %5635 = vmatprep.mubr.msk.f32.mxu1 %vm51_vm1, %v4897_v6  ;;  %5634 = vmatpush3.msk.msra.mxu1 %vm76_vm0, %v4905_v8 }
0x1518   :  { %5636 = vmatmul.mubr.msk.f32.vlgmr.msra.gmra.mrb[58].mxu1 %vm51_vm1, %v4898_v10 }
0x1519   :  { %5638 = vmatprep.mubr.msk.f32.mxu1 %vm51_vm1, %v4899_v12 }
0x151c   :  { %5639 = vmatmul.mubr.msk.f32.gmra.mrb[60].mxu1 %vm51_vm1, %v4900_v0 }
0x151d   :  { %5641 = vmatprep.mubr.msk.f32.mxu1 %vm51_vm1, %v4901_v13 }
0x1520   :  { %5642 = vmatmul.mubr.msk.f32.gmra.mrb[62].mxu1 %vm51_vm1, %v4902_v14 }
0x1521   :  { %5644 = vmatprep.mubr.msk.f32.mxu1 %vm51_vm1, %v4903_v53 }
0x15df   :  { %v4643_v22 = vpop.f32.mrb[56].mxu1 }
0x15e0   :  { %v5610_v25 = vpop.f32.mrb[57].mxu1  ;;  %v4644_v44 = vadd.f32 %v4643_v22, %v6495_v17 }
0x15e7   :  { %v4725_v46 = vpop.f32.mrb[54].mxu1 }
0x15e8   :  { %v5951_v27 = vadd.f32 %v4725_v46, %v6487_v1  ;;  %v4727_v33 = vpop.f32.mrb[55].mxu1 }
0x15e9   :  { %v5952_v39 = vadd.f32 %v4727_v33, %v6490_v16 }
0x15ea   :  { %v4802_v34 = vmul.f32 0.5, %v5951_v27 }
0x15eb   :  { %v5637_v43 = vpop.f32.mrb[58].mxu1  ;;  %v4803_v32 = vmul.f32 0.5, %v5952_v39 }
0x15ec   :  { %6079 = vtanh.f32 %v4802_v34  ;;  %v5009_v24 = vadd.f32 %v5637_v43, %v4909_v38  ;;  %v5003_v7 = vpop.f32.mrb[59].mxu1 }
0x15ed   :  { %v5004_v45 = vadd.f32 %v5003_v7, %v4909_v38  ;;  %6081 = vtanh.f32 %v4803_v32 }
0x15ee   :  { %5043 = vst.msk [vmem:[%s6775_s2 + $0x8] sm:$0xff] %vm51_vm1, %v5009_v24 }
0x15ef   :  { %5042 = vst.msk [vmem:[%s6775_s2] sm:$0xff] %vm51_vm1, %v5004_v45  ;;  %v5640_v1 = vpop.f32.mrb[60].mxu1 }
0x15f0   :  { %v5019_v47 = vadd.f32 %v5640_v1, %v4909_v38  ;;  %v5013_v49 = vpop.f32.mrb[61].mxu1 }
0x15f1   :  { %v5014_v16 = vadd.f32 %v5013_v49, %v4909_v38 }
0x15f2   :  { %5045 = vst.msk [vmem:[%s6775_s2 + $0x18] sm:$0xff] %vm51_vm1, %v5019_v47 }
0x15f3   :  { %5044 = vst.msk [vmem:[%s6775_s2 + $0x10] sm:$0xff] %vm51_vm1, %v5014_v16  ;;  %v5643_v51 = vpop.f32.mrb[62].mxu1 }
0x15f4   :  { %v5029_v52 = vadd.f32 %v5643_v51, %v4909_v38  ;;  %v5023_v56 = vpop.f32.mrb[63].mxu1 }
0x15f5   :  { %v5024_v58 = vadd.f32 %v5023_v56, %v4909_v38 }
0x15f6   :  { %v6080_v59 = vpop.eup %6079  ;;  %5047 = vst.msk [vmem:[%s6775_s2 + $0x28] sm:$0xff] %vm51_vm1, %v5029_v52 }
0x15f7   :  { %v4806_v23 = vadd.f32 1.0, %v6080_v59  ;;  %5046 = vst.msk [vmem:[%s6775_s2 + $0x20] sm:$0xff] %vm51_vm1, %v5024_v58  ;;  %v6082_v60 = vpop.eup %6081 }
0x15f8   :  { %v4807_v41 = vadd.f32 1.0, %v6082_v60 }
0x15f9   :  { %v4808_v63 = vmul.f32 0.5, %v4806_v23 }
0x15fa   :  { %v4809_v9 = vmul.f32 0.5, %v4807_v41 }
0x15fb   :  { %v4811_v28 = vmul.f32 %v4810_v37, %v4808_v63 }
0x15fc   :  { %v4814_v20 = vsub.f32 1.0, %v4809_v9  ;;  %v4816_v62 = vmul.f32 %v4809_v9, %v6689_v15 }
0x15fd   :  { %v4812_v35 = vadd.f32 %v4811_v28, %v4644_v44 }
0x15ff   :  { %6083 = vtanh.f32 %v4812_v35 }
0x1609   :  { %v6084_v54 = vpop.eup %6083 }
0x160a   :  { %v4815_v61 = vmul.f32 %v6084_v54, %v4814_v20 }
0x160c   :  { %v4817_v2 = vadd.f32 %v4816_v62, %v4815_v61 }
0x160e   :  { %5631 = vmatmul.mubr.msk.f32.vlgmr.msra.gmra.mrb[46].mxu0 %vm320_vm3, %v4817_v2 }
0x16e1   :  { %v4891_v57 = vpop.f32.mrb[46].mxu0 }
0x16e2   :  { %v4892_v31 = vadd.f32 %v4891_v57, %v6458_v40  ;;  %v5632_v3 = vpop.f32.mrb[47].mxu0 }
0x16e4   :  { %v4895_v48 = vmax.f32 %v4892_v31, 0.0 }
0x16e6   :  { %4896 = vst.msk [vmem:[#allocation2 + $0x38] sm:$0xff] %vm51_vm1, %v4895_v48 }
0x16ed   :  { %v4904_v17 = vld [vmem:[#allocation2 + $0x38] sm:$0xff] }
0x16ee   :  { %5645 = vmatmul.mubr.msk.f32.gmra.mrb[64].mxu1 %vm51_vm1, %v4904_v17 }
0x17c1   :  { %v5646_v4 = vpop.f32.mrb[64].mxu1 }
0x17c2   :  { %v5039_v26 = vadd.f32 %v5646_v4, %v4909_v38  ;;  %v5033_v29 = vpop.f32.mrb[65].mxu1 }
0x17c3   :  { %v5034_v30 = vadd.f32 %v5033_v29, %v4909_v38 }
0x17c4   :  { %5049 = vst.msk [vmem:[%s6775_s2 + $0x38] sm:$0xff] %vm51_vm1, %v5039_v26 }
0x17c5   :  { %5048 = vst.msk [vmem:[%s6775_s2 + $0x30] sm:$0xff] %vm51_vm1, %v5034_v30 }
0x17c6   :  { %5054 = vsyncpa [#allocation4], 1 }

</bundles_post_ra>
